<compile_context>
chip_gen: v5e
topology: v5e:2x2
jax: 0.10.0
libtpu: 0.0.40
codegen_flags: <defaults>
</compile_context>

<pallas_src>
import functools

import jax
import jax.numpy as jnp
from jax import lax
from jax.experimental import pallas as pl
from jax.experimental.pallas import tpu as pltpu


# ----------------------------- Pallas kernel -------------------------------- #

def _make_slstm_kernel(num_layers, T, H, unroll):
    H2 = 2 * H

    def kernel(*refs):
        # refs: x, (m1, m2, b, whh) * num_layers, ws1, ws2, b_score, s_out,
        #       xw_scratch (T,8H), raw_a (T,2H), raw_b (T,2H)
        x_ref = refs[0]
        layer_refs = [tuple(refs[1 + 4 * l: 5 + 4 * l]) for l in range(num_layers)]
        ws1_ref = refs[1 + 4 * num_layers]
        ws2_ref = refs[2 + 4 * num_layers]
        bsc_ref = refs[3 + 4 * num_layers]
        s_ref = refs[4 + 4 * num_layers]
        xw_ref = refs[5 + 4 * num_layers]
        raw_refs = [refs[6 + 4 * num_layers], refs[7 + 4 * num_layers]]

        # Time-reversal permutation matrix, built once in-kernel (no per-call XLA glue).
        row_i = lax.broadcasted_iota(jnp.int32, (T, T), 0)
        col_i = lax.broadcasted_iota(jnp.int32, (T, T), 1)
        rev = (row_i + col_i == T - 1).astype(jnp.float32)

        def run_layer(cur, m1_ref, m2_ref, b_ref, whh_ref, out_ref):
            # Build the packed gate projection for BOTH directions with the bwd
            # columns already time-reversed:  xw = cur @ M1 + (R @ cur) @ M2 + b.
            cur_rev = jnp.dot(rev, cur, preferred_element_type=jnp.float32)
            xw_ref[...] = (
                jnp.dot(cur, m1_ref[...], preferred_element_type=jnp.float32)
                + jnp.dot(cur_rev, m2_ref[...], preferred_element_type=jnp.float32)
                + b_ref[...])
            whh = whh_ref[...]                     # (2H, 8H) block-structured, in vregs

            def step(s, carry):
                h, c = carry                       # (1, 2H) each: [fwd | bwd]
                gates = xw_ref[pl.ds(s, 1), :] + jnp.dot(
                    h, whh, preferred_element_type=jnp.float32)   # (1, 8H)
                sig = jax.nn.sigmoid(gates[:, 0:6 * H])           # [ i | f | o ]
                g = jnp.tanh(gates[:, 6 * H:8 * H])               # [ g ]
                c_new = sig[:, 2 * H:4 * H] * c + sig[:, 0:2 * H] * g
                h_new = sig[:, 4 * H:6 * H] * jnp.tanh(c_new)
                out_ref[pl.ds(s, 1), :] = h_new    # one contiguous (1,2H) store
                return (h_new, c_new)

            zeros = jnp.zeros((1, H2), jnp.float32)
            lax.fori_loop(0, T, step, (zeros, zeros), unroll=unroll)

        cur = x_ref[...]
        for l in range(num_layers):
            m1_ref, m2_ref, b_ref, whh_ref = layer_refs[l]
            out_ref = raw_refs[l % 2]
            run_layer(cur, m1_ref, m2_ref, b_ref, whh_ref, out_ref)
            cur = out_ref[...]                     # raw layout: bwd half time-reversed

        # Fused score head: the bwd-half de-reversal is folded into ws1/ws2.
        cur_rev = jnp.dot(rev, cur, preferred_element_type=jnp.float32)
        logits = (jnp.dot(cur, ws1_ref[...], preferred_element_type=jnp.float32)
                  + jnp.dot(cur_rev, ws2_ref[...], preferred_element_type=jnp.float32)
                  + bsc_ref[...])
        s_ref[...] = jax.nn.sigmoid(logits)

    return kernel


# ------------------------------- Wrappers ------------------------------------ #

def _full_spec(shape):
    # whole array in VMEM (block == full array dims, grid=()).
    return pl.BlockSpec(shape, lambda: (0,) * len(shape))


def prepare_params(params, num_layers=2):
    """One-time host-side packing (hoisted out of the per-call forward path).

    Column layout of every packed projection: [ i(2H) | f(2H) | o(2H) | g(2H) ],
    each 2H block ordered [fwd | bwd].  PyTorch-equivalent gate order is [i,f,g,o].
    For layers > 0, the previous layer's raw output has its bwd half time-reversed;
    that reversal is folded into (M1, M2) so the kernel never re-materializes it.
    """
    H = params["whh_l0"].shape[0]

    def place_cols(w, d):
        rows = w.shape[0]
        out = jnp.zeros((rows, 8 * H), jnp.float32)
        for blk, sg in enumerate((0, 1, 3, 2)):          # dest [i,f,o,g] <- src [i,f,g,o]
            out = out.at[:, blk * 2 * H + d * H: blk * 2 * H + (d + 1) * H].set(
                w[:, sg * H:(sg + 1) * H])
        return out

    packed = {}
    for l in range(num_layers):
        pf = place_cols(params[f"wih_l{l}"], 0)
        pb = place_cols(params[f"wih_l{l}_rev"], 1)
        if l == 0:
            m1, m2 = pf, pb
        else:
            m1 = jnp.concatenate([pf[:H], pb[H:]], axis=0)
            m2 = jnp.concatenate([pb[:H], pf[H:]], axis=0)
        packed[f"m1_l{l}"] = m1
        packed[f"m2_l{l}"] = m2
        packed[f"b_l{l}"] = (place_cols(params[f"b_l{l}"], 0)
                             + place_cols(params[f"b_l{l}_rev"], 1))
        packed[f"whh_l{l}"] = jnp.concatenate(
            [place_cols(params[f"whh_l{l}"], 0),
             place_cols(params[f"whh_l{l}_rev"], 1)], axis=0)
    zH = jnp.zeros((H, 1), jnp.float32)
    packed["ws1"] = jnp.concatenate([params["w_score"][:H], zH], axis=0)
    packed["ws2"] = jnp.concatenate([zH, params["w_score"][H:]], axis=0)
    packed["b_score"] = params["b_score"]
    return {k: jnp.asarray(v, jnp.float32) for k, v in packed.items()}


@functools.partial(jax.jit, static_argnames=("num_layers",))
def slstm_forward(x, packed, num_layers=2):
    """x: (seq_len, 1, input_size) -> scores: (seq_len, 1)."""
    xin = x[:, 0, :]                       # squeeze batch=1 -> (T, input_size)
    T = xin.shape[0]
    H = packed["whh_l0"].shape[0] // 2

    args = [xin]
    in_specs = [_full_spec(xin.shape)]
    for l in range(num_layers):
        for name in ("m1", "m2", "b", "whh"):
            a = packed[f"{name}_l{l}"]
            args.append(a)
            in_specs.append(_full_spec(a.shape))
    for name in ("ws1", "ws2", "b_score"):
        a = packed[name]
        args.append(a)
        in_specs.append(_full_spec(a.shape))

    unroll = True if T <= 64 else 8
    kernel = _make_slstm_kernel(num_layers, T, H, unroll)
    return pl.pallas_call(
        kernel,
        out_shape=jax.ShapeDtypeStruct((T, 1), jnp.float32),
        in_specs=in_specs,
        out_specs=_full_spec((T, 1)),
        scratch_shapes=[pltpu.VMEM((T, 8 * H), jnp.float32),   # packed gate projection
                        pltpu.VMEM((T, 2 * H), jnp.float32),   # layer raw act (ping)
                        pltpu.VMEM((T, 2 * H), jnp.float32)],  # layer raw act (pong)
    )(*args)


def init_params(key, input_size, hidden_size, num_layers=2):
    """Deterministic parameter init mimicking PyTorch's U(-1/sqrt(H), 1/sqrt(H)).

    Layout: W_ih (Din, 4H), W_hh (H, 4H), gate order [i, f, g, o], b = b_ih + b_hh.
    """
    params = {}
    bound = 1.0 / jnp.sqrt(jnp.float32(hidden_size))
    for l in range(num_layers):
        in_dim = input_size if l == 0 else 2 * hidden_size
        for suffix in ("", "_rev"):
            key, k1, k2, k3, k4 = jax.random.split(key, 5)
            params[f"wih_l{l}{suffix}"] = jax.random.uniform(
                k1, (in_dim, 4 * hidden_size), jnp.float32, -bound, bound)
            params[f"whh_l{l}{suffix}"] = jax.random.uniform(
                k2, (hidden_size, 4 * hidden_size), jnp.float32, -bound, bound)
            b_ih = jax.random.uniform(k3, (4 * hidden_size,), jnp.float32, -bound, bound)
            b_hh = jax.random.uniform(k4, (4 * hidden_size,), jnp.float32, -bound, bound)
            params[f"b_l{l}{suffix}"] = (b_ih + b_hh).reshape(1, 4 * hidden_size)
    key, k1, k2 = jax.random.split(key, 3)
    lin_bound = 1.0 / jnp.sqrt(jnp.float32(2 * hidden_size))
    params["w_score"] = jax.random.uniform(
        k1, (2 * hidden_size, 1), jnp.float32, -lin_bound, lin_bound)
    params["b_score"] = jax.random.uniform(k2, (1, 1), jnp.float32, -lin_bound, lin_bound)
    return params


# ------------------------------ Pure-JAX reference --------------------------- #

def _ref_direction(x, wih, whh, b):
    H = whh.shape[0]

    def step(carry, xt):
        h, c = carry
        gates = xt @ wih + h @ whh + b[0]
        i = jax.nn.sigmoid(gates[0 * H:1 * H])
        f = jax.nn.sigmoid(gates[1 * H:2 * H])
        g = jnp.tanh(gates[2 * H:3 * H])
        o = jax.nn.sigmoid(gates[3 * H:4 * H])
        c = f * c + i * g
        h = o * jnp.tanh(c)
        return (h, c), h

    (_, _), hs = lax.scan(step, (jnp.zeros(H), jnp.zeros(H)), x)
    return hs


def slstm_ref(x, params, num_layers=2):
    layer_in = x[:, 0, :]
    for l in range(num_layers):
        fwd = _ref_direction(layer_in, params[f"wih_l{l}"],
                             params[f"whh_l{l}"], params[f"b_l{l}"])
        bwd = _ref_direction(layer_in[::-1], params[f"wih_l{l}_rev"],
                             params[f"whh_l{l}_rev"], params[f"b_l{l}_rev"])[::-1]
        layer_in = jnp.concatenate([fwd, bwd], axis=-1)
    return jax.nn.sigmoid(layer_in @ params["w_score"] + params["b_score"])


# ----------------------------------- Main ------------------------------------ #

if __name__ == "__main__":
    seq_len, input_size, hidden_size, num_layers = 8, 64, 32, 2

    key = jax.random.PRNGKey(0)
    key, kx = jax.random.split(key)
    x = jax.random.normal(kx, (seq_len, 1, input_size), jnp.float32)
    params = init_params(key, input_size, hidden_size, num_layers)

    # One-time packing (hoisted out of the per-call forward path).
    packed = prepare_params(params, num_layers=num_layers)
    packed = jax.block_until_ready(packed)

    scores = slstm_forward(x, packed, num_layers=num_layers)
    scores = jax.block_until_ready(scores)
    assert scores.shape == (seq_len, 1)

    ref = slstm_ref(x, params, num_layers=num_layers)
    assert jnp.allclose(scores, ref, rtol=1e-4, atol=1e-5), (
        float(jnp.max(jnp.abs(scores - ref))))

    print("KERNEL_OK")
</pallas_src>

<mosaic_0001>
module attributes {stable_mosaic.version = 11 : i64} {
  func.func @kernel(%arg0: memref<8x64xf32, #tpu.memory_space<vmem>>, %arg1: memref<64x256xf32, #tpu.memory_space<vmem>>, %arg2: memref<64x256xf32, #tpu.memory_space<vmem>>, %arg3: memref<1x256xf32, #tpu.memory_space<vmem>>, %arg4: memref<64x256xf32, #tpu.memory_space<vmem>>, %arg5: memref<64x256xf32, #tpu.memory_space<vmem>>, %arg6: memref<64x256xf32, #tpu.memory_space<vmem>>, %arg7: memref<1x256xf32, #tpu.memory_space<vmem>>, %arg8: memref<64x256xf32, #tpu.memory_space<vmem>>, %arg9: memref<64x1xf32, #tpu.memory_space<vmem>>, %arg10: memref<64x1xf32, #tpu.memory_space<vmem>>, %arg11: memref<1x1xf32, #tpu.memory_space<vmem>>, %arg12: memref<8x1xf32, #tpu.memory_space<vmem>>, %arg13: memref<8x256xf32, #tpu.memory_space<vmem>>, %arg14: memref<8x64xf32, #tpu.memory_space<vmem>>, %arg15: memref<8x64xf32, #tpu.memory_space<vmem>>) attributes {dimension_semantics = [], scalar_prefetch = 0 : i64, scratch_operands = 3 : i64, tpu.core_type = #tpu.core_type<tc>} {
    %0 = tpu.iota {dimensions = array<i32: 0>} : vector<8x8xi32>
    %1 = tpu.iota {dimensions = array<i32: 1>} : vector<8x8xi32>
    %2 = arith.addi %0, %1 : vector<8x8xi32>
    %c7_i32 = arith.constant 7 : i32
    %3 = vector.broadcast %c7_i32 : i32 to vector<8x8xi32>
    %4 = arith.cmpi eq, %2, %3 : vector<8x8xi32>
    %5 = arith.extui %4 : vector<8x8xi1> to vector<8x8xi32>
    %6 = arith.sitofp %5 : vector<8x8xi32> to vector<8x8xf32>
    %c0 = arith.constant 0 : index
    %c0_0 = arith.constant 0 : index
    %7 = vector.load %arg0[%c0, %c0_0] : memref<8x64xf32, #tpu.memory_space<vmem>>, vector<8x64xf32>
    %cst = arith.constant dense<0.000000e+00> : vector<8x64xf32>
    %8 = tpu.matmul %6, %7, %cst {dimension_numbers = #tpu.dot_dimension_numbers<[1], [0], [0], [1], [0, 0, 1, 1], [], []>} : vector<8x8xf32>, vector<8x64xf32>, vector<8x64xf32> -> vector<8x64xf32>
    %c0_1 = arith.constant 0 : index
    %c0_2 = arith.constant 0 : index
    %9 = vector.load %arg1[%c0_1, %c0_2] : memref<64x256xf32, #tpu.memory_space<vmem>>, vector<64x256xf32>
    %cst_3 = arith.constant dense<0.000000e+00> : vector<8x256xf32>
    %10 = tpu.matmul %7, %9, %cst_3 {dimension_numbers = #tpu.dot_dimension_numbers<[1], [0], [0], [1], [0, 0, 1, 1], [], []>} : vector<8x64xf32>, vector<64x256xf32>, vector<8x256xf32> -> vector<8x256xf32>
    %c0_4 = arith.constant 0 : index
    %c0_5 = arith.constant 0 : index
    %11 = vector.load %arg2[%c0_4, %c0_5] : memref<64x256xf32, #tpu.memory_space<vmem>>, vector<64x256xf32>
    %cst_6 = arith.constant dense<0.000000e+00> : vector<8x256xf32>
    %12 = tpu.matmul %8, %11, %cst_6 {dimension_numbers = #tpu.dot_dimension_numbers<[1], [0], [0], [1], [0, 0, 1, 1], [], []>} : vector<8x64xf32>, vector<64x256xf32>, vector<8x256xf32> -> vector<8x256xf32>
    %13 = arith.addf %10, %12 : vector<8x256xf32>
    %c0_7 = arith.constant 0 : index
    %c0_8 = arith.constant 0 : index
    %14 = vector.load %arg3[%c0_7, %c0_8] : memref<1x256xf32, #tpu.memory_space<vmem>>, vector<1x256xf32>
    %15 = vector.broadcast %14 : vector<1x256xf32> to vector<8x256xf32>
    %16 = arith.addf %13, %15 : vector<8x256xf32>
    %c0_9 = arith.constant 0 : index
    %c0_10 = arith.constant 0 : index
    %17 = vector.load %arg13[%c0_9, %c0_10] : memref<8x256xf32, #tpu.memory_space<vmem>>, vector<8x256xf32>
    tpu.vector_store %arg13[%c0_9, %c0_10], %16 {strides = array<i32>} : memref<8x256xf32, #tpu.memory_space<vmem>>, vector<8x256xf32>,
    %c0_11 = arith.constant 0 : index
    %c0_12 = arith.constant 0 : index
    %18 = vector.load %arg4[%c0_11, %c0_12] : memref<64x256xf32, #tpu.memory_space<vmem>>, vector<64x256xf32>
    %cst_13 = arith.constant 0.000000e+00 : f32
    %19 = vector.broadcast %cst_13 : f32 to vector<1x64xf32>
    %c0_i32 = arith.constant 0 : i32
    %20 = arith.index_cast %c0_i32 : i32 to index
    %c0_14 = arith.constant 0 : index
    %21 = vector.load %arg13[%20, %c0_14] : memref<8x256xf32, #tpu.memory_space<vmem>>, vector<1x256xf32>
    %cst_15 = arith.constant dense<0.000000e+00> : vector<1x256xf32>
    %22 = tpu.matmul %19, %18, %cst_15 {dimension_numbers = #tpu.dot_dimension_numbers<[1], [0], [0], [1], [0, 0, 1, 1], [], []>} : vector<1x64xf32>, vector<64x256xf32>, vector<1x256xf32> -> vector<1x256xf32>
    %23 = arith.addf %21, %22 : vector<1x256xf32>
    %24 = vector.extract_strided_slice %23 {offsets = [0, 0], sizes = [1, 192], strides = [1, 1]} : vector<1x256xf32> to vector<1x192xf32>
    %25 = arith.negf %24 : vector<1x192xf32>
    %26 = math.exp %25 : vector<1x192xf32>
    %cst_16 = arith.constant 1.000000e+00 : f32
    %27 = vector.broadcast %cst_16 : f32 to vector<1x192xf32>
    %28 = arith.addf %27, %26 : vector<1x192xf32>
    %29 = arith.divf %27, %28 : vector<1x192xf32>
    %30 = vector.extract_strided_slice %23 {offsets = [0, 192], sizes = [1, 64], strides = [1, 1]} : vector<1x256xf32> to vector<1x64xf32>
    %31 = math.tanh %30 : vector<1x64xf32>
    %32 = vector.extract_strided_slice %29 {offsets = [0, 64], sizes = [1, 64], strides = [1, 1]} : vector<1x192xf32> to vector<1x64xf32>
    %33 = arith.mulf %32, %19 : vector<1x64xf32>
    %34 = vector.extract_strided_slice %29 {offsets = [0, 0], sizes = [1, 64], strides = [1, 1]} : vector<1x192xf32> to vector<1x64xf32>
    %35 = arith.mulf %34, %31 : vector<1x64xf32>
    %36 = arith.addf %33, %35 : vector<1x64xf32>
    %37 = vector.extract_strided_slice %29 {offsets = [0, 128], sizes = [1, 64], strides = [1, 1]} : vector<1x192xf32> to vector<1x64xf32>
    %38 = math.tanh %36 : vector<1x64xf32>
    %39 = arith.mulf %37, %38 : vector<1x64xf32>
    %40 = arith.index_cast %c0_i32 : i32 to index
    %c0_17 = arith.constant 0 : index
    %41 = vector.load %arg14[%40, %c0_17] : memref<8x64xf32, #tpu.memory_space<vmem>>, vector<1x64xf32>
    tpu.vector_store %arg14[%40, %c0_17], %39 {strides = array<i32>} : memref<8x64xf32, #tpu.memory_space<vmem>>, vector<1x64xf32>,
    %c1_i32 = arith.constant 1 : i32
    %42 = arith.index_cast %c1_i32 : i32 to index
    %c0_18 = arith.constant 0 : index
    %43 = vector.load %arg13[%42, %c0_18] : memref<8x256xf32, #tpu.memory_space<vmem>>, vector<1x256xf32>
    %cst_19 = arith.constant dense<0.000000e+00> : vector<1x256xf32>
    %44 = tpu.matmul %39, %18, %cst_19 {dimension_numbers = #tpu.dot_dimension_numbers<[1], [0], [0], [1], [0, 0, 1, 1], [], []>} : vector<1x64xf32>, vector<64x256xf32>, vector<1x256xf32> -> vector<1x256xf32>
    %45 = arith.addf %43, %44 : vector<1x256xf32>
    %46 = vector.extract_strided_slice %45 {offsets = [0, 0], sizes = [1, 192], strides = [1, 1]} : vector<1x256xf32> to vector<1x192xf32>
    %47 = arith.negf %46 : vector<1x192xf32>
    %48 = math.exp %47 : vector<1x192xf32>
    %cst_20 = arith.constant 1.000000e+00 : f32
    %49 = vector.broadcast %cst_20 : f32 to vector<1x192xf32>
    %50 = arith.addf %49, %48 : vector<1x192xf32>
    %51 = arith.divf %49, %50 : vector<1x192xf32>
    %52 = vector.extract_strided_slice %45 {offsets = [0, 192], sizes = [1, 64], strides = [1, 1]} : vector<1x256xf32> to vector<1x64xf32>
    %53 = math.tanh %52 : vector<1x64xf32>
    %54 = vector.extract_strided_slice %51 {offsets = [0, 64], sizes = [1, 64], strides = [1, 1]} : vector<1x192xf32> to vector<1x64xf32>
    %55 = arith.mulf %54, %36 : vector<1x64xf32>
    %56 = vector.extract_strided_slice %51 {offsets = [0, 0], sizes = [1, 64], strides = [1, 1]} : vector<1x192xf32> to vector<1x64xf32>
    %57 = arith.mulf %56, %53 : vector<1x64xf32>
    %58 = arith.addf %55, %57 : vector<1x64xf32>
    %59 = vector.extract_strided_slice %51 {offsets = [0, 128], sizes = [1, 64], strides = [1, 1]} : vector<1x192xf32> to vector<1x64xf32>
    %60 = math.tanh %58 : vector<1x64xf32>
    %61 = arith.mulf %59, %60 : vector<1x64xf32>
    %62 = arith.index_cast %c1_i32 : i32 to index
    %c0_21 = arith.constant 0 : index
    %63 = vector.load %arg14[%62, %c0_21] : memref<8x64xf32, #tpu.memory_space<vmem>>, vector<1x64xf32>
    tpu.vector_store %arg14[%62, %c0_21], %61 {strides = array<i32>} : memref<8x64xf32, #tpu.memory_space<vmem>>, vector<1x64xf32>,
    %c2_i32 = arith.constant 2 : i32
    %64 = arith.index_cast %c2_i32 : i32 to index
    %c0_22 = arith.constant 0 : index
    %65 = vector.load %arg13[%64, %c0_22] : memref<8x256xf32, #tpu.memory_space<vmem>>, vector<1x256xf32>
    %cst_23 = arith.constant dense<0.000000e+00> : vector<1x256xf32>
    %66 = tpu.matmul %61, %18, %cst_23 {dimension_numbers = #tpu.dot_dimension_numbers<[1], [0], [0], [1], [0, 0, 1, 1], [], []>} : vector<1x64xf32>, vector<64x256xf32>, vector<1x256xf32> -> vector<1x256xf32>
    %67 = arith.addf %65, %66 : vector<1x256xf32>
    %68 = vector.extract_strided_slice %67 {offsets = [0, 0], sizes = [1, 192], strides = [1, 1]} : vector<1x256xf32> to vector<1x192xf32>
    %69 = arith.negf %68 : vector<1x192xf32>
    %70 = math.exp %69 : vector<1x192xf32>
    %cst_24 = arith.constant 1.000000e+00 : f32
    %71 = vector.broadcast %cst_24 : f32 to vector<1x192xf32>
    %72 = arith.addf %71, %70 : vector<1x192xf32>
    %73 = arith.divf %71, %72 : vector<1x192xf32>
    %74 = vector.extract_strided_slice %67 {offsets = [0, 192], sizes = [1, 64], strides = [1, 1]} : vector<1x256xf32> to vector<1x64xf32>
    %75 = math.tanh %74 : vector<1x64xf32>
    %76 = vector.extract_strided_slice %73 {offsets = [0, 64], sizes = [1, 64], strides = [1, 1]} : vector<1x192xf32> to vector<1x64xf32>
    %77 = arith.mulf %76, %58 : vector<1x64xf32>
    %78 = vector.extract_strided_slice %73 {offsets = [0, 0], sizes = [1, 64], strides = [1, 1]} : vector<1x192xf32> to vector<1x64xf32>
    %79 = arith.mulf %78, %75 : vector<1x64xf32>
    %80 = arith.addf %77, %79 : vector<1x64xf32>
    %81 = vector.extract_strided_slice %73 {offsets = [0, 128], sizes = [1, 64], strides = [1, 1]} : vector<1x192xf32> to vector<1x64xf32>
    %82 = math.tanh %80 : vector<1x64xf32>
    %83 = arith.mulf %81, %82 : vector<1x64xf32>
    %84 = arith.index_cast %c2_i32 : i32 to index
    %c0_25 = arith.constant 0 : index
    %85 = vector.load %arg14[%84, %c0_25] : memref<8x64xf32, #tpu.memory_space<vmem>>, vector<1x64xf32>
    tpu.vector_store %arg14[%84, %c0_25], %83 {strides = array<i32>} : memref<8x64xf32, #tpu.memory_space<vmem>>, vector<1x64xf32>,
    %c3_i32 = arith.constant 3 : i32
    %86 = arith.index_cast %c3_i32 : i32 to index
    %c0_26 = arith.constant 0 : index
    %87 = vector.load %arg13[%86, %c0_26] : memref<8x256xf32, #tpu.memory_space<vmem>>, vector<1x256xf32>
    %cst_27 = arith.constant dense<0.000000e+00> : vector<1x256xf32>
    %88 = tpu.matmul %83, %18, %cst_27 {dimension_numbers = #tpu.dot_dimension_numbers<[1], [0], [0], [1], [0, 0, 1, 1], [], []>} : vector<1x64xf32>, vector<64x256xf32>, vector<1x256xf32> -> vector<1x256xf32>
    %89 = arith.addf %87, %88 : vector<1x256xf32>
    %90 = vector.extract_strided_slice %89 {offsets = [0, 0], sizes = [1, 192], strides = [1, 1]} : vector<1x256xf32> to vector<1x192xf32>
    %91 = arith.negf %90 : vector<1x192xf32>
    %92 = math.exp %91 : vector<1x192xf32>
    %cst_28 = arith.constant 1.000000e+00 : f32
    %93 = vector.broadcast %cst_28 : f32 to vector<1x192xf32>
    %94 = arith.addf %93, %92 : vector<1x192xf32>
    %95 = arith.divf %93, %94 : vector<1x192xf32>
    %96 = vector.extract_strided_slice %89 {offsets = [0, 192], sizes = [1, 64], strides = [1, 1]} : vector<1x256xf32> to vector<1x64xf32>
    %97 = math.tanh %96 : vector<1x64xf32>
    %98 = vector.extract_strided_slice %95 {offsets = [0, 64], sizes = [1, 64], strides = [1, 1]} : vector<1x192xf32> to vector<1x64xf32>
    %99 = arith.mulf %98, %80 : vector<1x64xf32>
    %100 = vector.extract_strided_slice %95 {offsets = [0, 0], sizes = [1, 64], strides = [1, 1]} : vector<1x192xf32> to vector<1x64xf32>
    %101 = arith.mulf %100, %97 : vector<1x64xf32>
    %102 = arith.addf %99, %101 : vector<1x64xf32>
    %103 = vector.extract_strided_slice %95 {offsets = [0, 128], sizes = [1, 64], strides = [1, 1]} : vector<1x192xf32> to vector<1x64xf32>
    %104 = math.tanh %102 : vector<1x64xf32>
    %105 = arith.mulf %103, %104 : vector<1x64xf32>
    %106 = arith.index_cast %c3_i32 : i32 to index
    %c0_29 = arith.constant 0 : index
    %107 = vector.load %arg14[%106, %c0_29] : memref<8x64xf32, #tpu.memory_space<vmem>>, vector<1x64xf32>
    tpu.vector_store %arg14[%106, %c0_29], %105 {strides = array<i32>} : memref<8x64xf32, #tpu.memory_space<vmem>>, vector<1x64xf32>,
    %c4_i32 = arith.constant 4 : i32
    %108 = arith.index_cast %c4_i32 : i32 to index
    %c0_30 = arith.constant 0 : index
    %109 = vector.load %arg13[%108, %c0_30] : memref<8x256xf32, #tpu.memory_space<vmem>>, vector<1x256xf32>
    %cst_31 = arith.constant dense<0.000000e+00> : vector<1x256xf32>
    %110 = tpu.matmul %105, %18, %cst_31 {dimension_numbers = #tpu.dot_dimension_numbers<[1], [0], [0], [1], [0, 0, 1, 1], [], []>} : vector<1x64xf32>, vector<64x256xf32>, vector<1x256xf32> -> vector<1x256xf32>
    %111 = arith.addf %109, %110 : vector<1x256xf32>
    %112 = vector.extract_strided_slice %111 {offsets = [0, 0], sizes = [1, 192], strides = [1, 1]} : vector<1x256xf32> to vector<1x192xf32>
    %113 = arith.negf %112 : vector<1x192xf32>
    %114 = math.exp %113 : vector<1x192xf32>
    %cst_32 = arith.constant 1.000000e+00 : f32
    %115 = vector.broadcast %cst_32 : f32 to vector<1x192xf32>
    %116 = arith.addf %115, %114 : vector<1x192xf32>
    %117 = arith.divf %115, %116 : vector<1x192xf32>
    %118 = vector.extract_strided_slice %111 {offsets = [0, 192], sizes = [1, 64], strides = [1, 1]} : vector<1x256xf32> to vector<1x64xf32>
    %119 = math.tanh %118 : vector<1x64xf32>
    %120 = vector.extract_strided_slice %117 {offsets = [0, 64], sizes = [1, 64], strides = [1, 1]} : vector<1x192xf32> to vector<1x64xf32>
    %121 = arith.mulf %120, %102 : vector<1x64xf32>
    %122 = vector.extract_strided_slice %117 {offsets = [0, 0], sizes = [1, 64], strides = [1, 1]} : vector<1x192xf32> to vector<1x64xf32>
    %123 = arith.mulf %122, %119 : vector<1x64xf32>
    %124 = arith.addf %121, %123 : vector<1x64xf32>
    %125 = vector.extract_strided_slice %117 {offsets = [0, 128], sizes = [1, 64], strides = [1, 1]} : vector<1x192xf32> to vector<1x64xf32>
    %126 = math.tanh %124 : vector<1x64xf32>
    %127 = arith.mulf %125, %126 : vector<1x64xf32>
    %128 = arith.index_cast %c4_i32 : i32 to index
    %c0_33 = arith.constant 0 : index
    %129 = vector.load %arg14[%128, %c0_33] : memref<8x64xf32, #tpu.memory_space<vmem>>, vector<1x64xf32>
    tpu.vector_store %arg14[%128, %c0_33], %127 {strides = array<i32>} : memref<8x64xf32, #tpu.memory_space<vmem>>, vector<1x64xf32>,
    %c5_i32 = arith.constant 5 : i32
    %130 = arith.index_cast %c5_i32 : i32 to index
    %c0_34 = arith.constant 0 : index
    %131 = vector.load %arg13[%130, %c0_34] : memref<8x256xf32, #tpu.memory_space<vmem>>, vector<1x256xf32>
    %cst_35 = arith.constant dense<0.000000e+00> : vector<1x256xf32>
    %132 = tpu.matmul %127, %18, %cst_35 {dimension_numbers = #tpu.dot_dimension_numbers<[1], [0], [0], [1], [0, 0, 1, 1], [], []>} : vector<1x64xf32>, vector<64x256xf32>, vector<1x256xf32> -> vector<1x256xf32>
    %133 = arith.addf %131, %132 : vector<1x256xf32>
    %134 = vector.extract_strided_slice %133 {offsets = [0, 0], sizes = [1, 192], strides = [1, 1]} : vector<1x256xf32> to vector<1x192xf32>
    %135 = arith.negf %134 : vector<1x192xf32>
    %136 = math.exp %135 : vector<1x192xf32>
    %cst_36 = arith.constant 1.000000e+00 : f32
    %137 = vector.broadcast %cst_36 : f32 to vector<1x192xf32>
    %138 = arith.addf %137, %136 : vector<1x192xf32>
    %139 = arith.divf %137, %138 : vector<1x192xf32>
    %140 = vector.extract_strided_slice %133 {offsets = [0, 192], sizes = [1, 64], strides = [1, 1]} : vector<1x256xf32> to vector<1x64xf32>
    %141 = math.tanh %140 : vector<1x64xf32>
    %142 = vector.extract_strided_slice %139 {offsets = [0, 64], sizes = [1, 64], strides = [1, 1]} : vector<1x192xf32> to vector<1x64xf32>
    %143 = arith.mulf %142, %124 : vector<1x64xf32>
    %144 = vector.extract_strided_slice %139 {offsets = [0, 0], sizes = [1, 64], strides = [1, 1]} : vector<1x192xf32> to vector<1x64xf32>
    %145 = arith.mulf %144, %141 : vector<1x64xf32>
    %146 = arith.addf %143, %145 : vector<1x64xf32>
    %147 = vector.extract_strided_slice %139 {offsets = [0, 128], sizes = [1, 64], strides = [1, 1]} : vector<1x192xf32> to vector<1x64xf32>
    %148 = math.tanh %146 : vector<1x64xf32>
    %149 = arith.mulf %147, %148 : vector<1x64xf32>
    %150 = arith.index_cast %c5_i32 : i32 to index
    %c0_37 = arith.constant 0 : index
    %151 = vector.load %arg14[%150, %c0_37] : memref<8x64xf32, #tpu.memory_space<vmem>>, vector<1x64xf32>
    tpu.vector_store %arg14[%150, %c0_37], %149 {strides = array<i32>} : memref<8x64xf32, #tpu.memory_space<vmem>>, vector<1x64xf32>,
    %c6_i32 = arith.constant 6 : i32
    %152 = arith.index_cast %c6_i32 : i32 to index
    %c0_38 = arith.constant 0 : index
    %153 = vector.load %arg13[%152, %c0_38] : memref<8x256xf32, #tpu.memory_space<vmem>>, vector<1x256xf32>
    %cst_39 = arith.constant dense<0.000000e+00> : vector<1x256xf32>
    %154 = tpu.matmul %149, %18, %cst_39 {dimension_numbers = #tpu.dot_dimension_numbers<[1], [0], [0], [1], [0, 0, 1, 1], [], []>} : vector<1x64xf32>, vector<64x256xf32>, vector<1x256xf32> -> vector<1x256xf32>
    %155 = arith.addf %153, %154 : vector<1x256xf32>
    %156 = vector.extract_strided_slice %155 {offsets = [0, 0], sizes = [1, 192], strides = [1, 1]} : vector<1x256xf32> to vector<1x192xf32>
    %157 = arith.negf %156 : vector<1x192xf32>
    %158 = math.exp %157 : vector<1x192xf32>
    %cst_40 = arith.constant 1.000000e+00 : f32
    %159 = vector.broadcast %cst_40 : f32 to vector<1x192xf32>
    %160 = arith.addf %159, %158 : vector<1x192xf32>
    %161 = arith.divf %159, %160 : vector<1x192xf32>
    %162 = vector.extract_strided_slice %155 {offsets = [0, 192], sizes = [1, 64], strides = [1, 1]} : vector<1x256xf32> to vector<1x64xf32>
    %163 = math.tanh %162 : vector<1x64xf32>
    %164 = vector.extract_strided_slice %161 {offsets = [0, 64], sizes = [1, 64], strides = [1, 1]} : vector<1x192xf32> to vector<1x64xf32>
    %165 = arith.mulf %164, %146 : vector<1x64xf32>
    %166 = vector.extract_strided_slice %161 {offsets = [0, 0], sizes = [1, 64], strides = [1, 1]} : vector<1x192xf32> to vector<1x64xf32>
    %167 = arith.mulf %166, %163 : vector<1x64xf32>
    %168 = arith.addf %165, %167 : vector<1x64xf32>
    %169 = vector.extract_strided_slice %161 {offsets = [0, 128], sizes = [1, 64], strides = [1, 1]} : vector<1x192xf32> to vector<1x64xf32>
    %170 = math.tanh %168 : vector<1x64xf32>
    %171 = arith.mulf %169, %170 : vector<1x64xf32>
    %172 = arith.index_cast %c6_i32 : i32 to index
    %c0_41 = arith.constant 0 : index
    %173 = vector.load %arg14[%172, %c0_41] : memref<8x64xf32, #tpu.memory_space<vmem>>, vector<1x64xf32>
    tpu.vector_store %arg14[%172, %c0_41], %171 {strides = array<i32>} : memref<8x64xf32, #tpu.memory_space<vmem>>, vector<1x64xf32>,
    %c7_i32_42 = arith.constant 7 : i32
    %174 = arith.index_cast %c7_i32_42 : i32 to index
    %c0_43 = arith.constant 0 : index
    %175 = vector.load %arg13[%174, %c0_43] : memref<8x256xf32, #tpu.memory_space<vmem>>, vector<1x256xf32>
    %cst_44 = arith.constant dense<0.000000e+00> : vector<1x256xf32>
    %176 = tpu.matmul %171, %18, %cst_44 {dimension_numbers = #tpu.dot_dimension_numbers<[1], [0], [0], [1], [0, 0, 1, 1], [], []>} : vector<1x64xf32>, vector<64x256xf32>, vector<1x256xf32> -> vector<1x256xf32>
    %177 = arith.addf %175, %176 : vector<1x256xf32>
    %178 = vector.extract_strided_slice %177 {offsets = [0, 0], sizes = [1, 192], strides = [1, 1]} : vector<1x256xf32> to vector<1x192xf32>
    %179 = arith.negf %178 : vector<1x192xf32>
    %180 = math.exp %179 : vector<1x192xf32>
    %cst_45 = arith.constant 1.000000e+00 : f32
    %181 = vector.broadcast %cst_45 : f32 to vector<1x192xf32>
    %182 = arith.addf %181, %180 : vector<1x192xf32>
    %183 = arith.divf %181, %182 : vector<1x192xf32>
    %184 = vector.extract_strided_slice %177 {offsets = [0, 192], sizes = [1, 64], strides = [1, 1]} : vector<1x256xf32> to vector<1x64xf32>
    %185 = math.tanh %184 : vector<1x64xf32>
    %186 = vector.extract_strided_slice %183 {offsets = [0, 64], sizes = [1, 64], strides = [1, 1]} : vector<1x192xf32> to vector<1x64xf32>
    %187 = arith.mulf %186, %168 : vector<1x64xf32>
    %188 = vector.extract_strided_slice %183 {offsets = [0, 0], sizes = [1, 64], strides = [1, 1]} : vector<1x192xf32> to vector<1x64xf32>
    %189 = arith.mulf %188, %185 : vector<1x64xf32>
    %190 = arith.addf %187, %189 : vector<1x64xf32>
    %191 = vector.extract_strided_slice %183 {offsets = [0, 128], sizes = [1, 64], strides = [1, 1]} : vector<1x192xf32> to vector<1x64xf32>
    %192 = math.tanh %190 : vector<1x64xf32>
    %193 = arith.mulf %191, %192 : vector<1x64xf32>
    %194 = arith.index_cast %c7_i32_42 : i32 to index
    %c0_46 = arith.constant 0 : index
    %195 = vector.load %arg14[%194, %c0_46] : memref<8x64xf32, #tpu.memory_space<vmem>>, vector<1x64xf32>
    tpu.vector_store %arg14[%194, %c0_46], %193 {strides = array<i32>} : memref<8x64xf32, #tpu.memory_space<vmem>>, vector<1x64xf32>,
    %c8_i32 = arith.constant 8 : i32
    %c0_47 = arith.constant 0 : index
    %c0_48 = arith.constant 0 : index
    %196 = vector.load %arg14[%c0_47, %c0_48] : memref<8x64xf32, #tpu.memory_space<vmem>>, vector<8x64xf32>
    %cst_49 = arith.constant dense<0.000000e+00> : vector<8x64xf32>
    %197 = tpu.matmul %6, %196, %cst_49 {dimension_numbers = #tpu.dot_dimension_numbers<[1], [0], [0], [1], [0, 0, 1, 1], [], []>} : vector<8x8xf32>, vector<8x64xf32>, vector<8x64xf32> -> vector<8x64xf32>
    %c0_50 = arith.constant 0 : index
    %c0_51 = arith.constant 0 : index
    %198 = vector.load %arg5[%c0_50, %c0_51] : memref<64x256xf32, #tpu.memory_space<vmem>>, vector<64x256xf32>
    %cst_52 = arith.constant dense<0.000000e+00> : vector<8x256xf32>
    %199 = tpu.matmul %196, %198, %cst_52 {dimension_numbers = #tpu.dot_dimension_numbers<[1], [0], [0], [1], [0, 0, 1, 1], [], []>} : vector<8x64xf32>, vector<64x256xf32>, vector<8x256xf32> -> vector<8x256xf32>
    %c0_53 = arith.constant 0 : index
    %c0_54 = arith.constant 0 : index
    %200 = vector.load %arg6[%c0_53, %c0_54] : memref<64x256xf32, #tpu.memory_space<vmem>>, vector<64x256xf32>
    %cst_55 = arith.constant dense<0.000000e+00> : vector<8x256xf32>
    %201 = tpu.matmul %197, %200, %cst_55 {dimension_numbers = #tpu.dot_dimension_numbers<[1], [0], [0], [1], [0, 0, 1, 1], [], []>} : vector<8x64xf32>, vector<64x256xf32>, vector<8x256xf32> -> vector<8x256xf32>
    %202 = arith.addf %199, %201 : vector<8x256xf32>
    %c0_56 = arith.constant 0 : index
    %c0_57 = arith.constant 0 : index
    %203 = vector.load %arg7[%c0_56, %c0_57] : memref<1x256xf32, #tpu.memory_space<vmem>>, vector<1x256xf32>
    %204 = vector.broadcast %203 : vector<1x256xf32> to vector<8x256xf32>
    %205 = arith.addf %202, %204 : vector<8x256xf32>
    %c0_58 = arith.constant 0 : index
    %c0_59 = arith.constant 0 : index
    %206 = vector.load %arg13[%c0_58, %c0_59] : memref<8x256xf32, #tpu.memory_space<vmem>>, vector<8x256xf32>
    tpu.vector_store %arg13[%c0_58, %c0_59], %205 {strides = array<i32>} : memref<8x256xf32, #tpu.memory_space<vmem>>, vector<8x256xf32>,
    %c0_60 = arith.constant 0 : index
    %c0_61 = arith.constant 0 : index
    %207 = vector.load %arg8[%c0_60, %c0_61] : memref<64x256xf32, #tpu.memory_space<vmem>>, vector<64x256xf32>
    %cst_62 = arith.constant 0.000000e+00 : f32
    %208 = vector.broadcast %cst_62 : f32 to vector<1x64xf32>
    %c0_i32_63 = arith.constant 0 : i32
    %209 = arith.index_cast %c0_i32_63 : i32 to index
    %c0_64 = arith.constant 0 : index
    %210 = vector.load %arg13[%209, %c0_64] : memref<8x256xf32, #tpu.memory_space<vmem>>, vector<1x256xf32>
    %cst_65 = arith.constant dense<0.000000e+00> : vector<1x256xf32>
    %211 = tpu.matmul %208, %207, %cst_65 {dimension_numbers = #tpu.dot_dimension_numbers<[1], [0], [0], [1], [0, 0, 1, 1], [], []>} : vector<1x64xf32>, vector<64x256xf32>, vector<1x256xf32> -> vector<1x256xf32>
    %212 = arith.addf %210, %211 : vector<1x256xf32>
    %213 = vector.extract_strided_slice %212 {offsets = [0, 0], sizes = [1, 192], strides = [1, 1]} : vector<1x256xf32> to vector<1x192xf32>
    %214 = arith.negf %213 : vector<1x192xf32>
    %215 = math.exp %214 : vector<1x192xf32>
    %cst_66 = arith.constant 1.000000e+00 : f32
    %216 = vector.broadcast %cst_66 : f32 to vector<1x192xf32>
    %217 = arith.addf %216, %215 : vector<1x192xf32>
    %218 = arith.divf %216, %217 : vector<1x192xf32>
    %219 = vector.extract_strided_slice %212 {offsets = [0, 192], sizes = [1, 64], strides = [1, 1]} : vector<1x256xf32> to vector<1x64xf32>
    %220 = math.tanh %219 : vector<1x64xf32>
    %221 = vector.extract_strided_slice %218 {offsets = [0, 64], sizes = [1, 64], strides = [1, 1]} : vector<1x192xf32> to vector<1x64xf32>
    %222 = arith.mulf %221, %208 : vector<1x64xf32>
    %223 = vector.extract_strided_slice %218 {offsets = [0, 0], sizes = [1, 64], strides = [1, 1]} : vector<1x192xf32> to vector<1x64xf32>
    %224 = arith.mulf %223, %220 : vector<1x64xf32>
    %225 = arith.addf %222, %224 : vector<1x64xf32>
    %226 = vector.extract_strided_slice %218 {offsets = [0, 128], sizes = [1, 64], strides = [1, 1]} : vector<1x192xf32> to vector<1x64xf32>
    %227 = math.tanh %225 : vector<1x64xf32>
    %228 = arith.mulf %226, %227 : vector<1x64xf32>
    %229 = arith.index_cast %c0_i32_63 : i32 to index
    %c0_67 = arith.constant 0 : index
    %230 = vector.load %arg15[%229, %c0_67] : memref<8x64xf32, #tpu.memory_space<vmem>>, vector<1x64xf32>
    tpu.vector_store %arg15[%229, %c0_67], %228 {strides = array<i32>} : memref<8x64xf32, #tpu.memory_space<vmem>>, vector<1x64xf32>,
    %c1_i32_68 = arith.constant 1 : i32
    %231 = arith.index_cast %c1_i32_68 : i32 to index
    %c0_69 = arith.constant 0 : index
    %232 = vector.load %arg13[%231, %c0_69] : memref<8x256xf32, #tpu.memory_space<vmem>>, vector<1x256xf32>
    %cst_70 = arith.constant dense<0.000000e+00> : vector<1x256xf32>
    %233 = tpu.matmul %228, %207, %cst_70 {dimension_numbers = #tpu.dot_dimension_numbers<[1], [0], [0], [1], [0, 0, 1, 1], [], []>} : vector<1x64xf32>, vector<64x256xf32>, vector<1x256xf32> -> vector<1x256xf32>
    %234 = arith.addf %232, %233 : vector<1x256xf32>
    %235 = vector.extract_strided_slice %234 {offsets = [0, 0], sizes = [1, 192], strides = [1, 1]} : vector<1x256xf32> to vector<1x192xf32>
    %236 = arith.negf %235 : vector<1x192xf32>
    %237 = math.exp %236 : vector<1x192xf32>
    %cst_71 = arith.constant 1.000000e+00 : f32
    %238 = vector.broadcast %cst_71 : f32 to vector<1x192xf32>
    %239 = arith.addf %238, %237 : vector<1x192xf32>
    %240 = arith.divf %238, %239 : vector<1x192xf32>
    %241 = vector.extract_strided_slice %234 {offsets = [0, 192], sizes = [1, 64], strides = [1, 1]} : vector<1x256xf32> to vector<1x64xf32>
    %242 = math.tanh %241 : vector<1x64xf32>
    %243 = vector.extract_strided_slice %240 {offsets = [0, 64], sizes = [1, 64], strides = [1, 1]} : vector<1x192xf32> to vector<1x64xf32>
    %244 = arith.mulf %243, %225 : vector<1x64xf32>
    %245 = vector.extract_strided_slice %240 {offsets = [0, 0], sizes = [1, 64], strides = [1, 1]} : vector<1x192xf32> to vector<1x64xf32>
    %246 = arith.mulf %245, %242 : vector<1x64xf32>
    %247 = arith.addf %244, %246 : vector<1x64xf32>
    %248 = vector.extract_strided_slice %240 {offsets = [0, 128], sizes = [1, 64], strides = [1, 1]} : vector<1x192xf32> to vector<1x64xf32>
    %249 = math.tanh %247 : vector<1x64xf32>
    %250 = arith.mulf %248, %249 : vector<1x64xf32>
    %251 = arith.index_cast %c1_i32_68 : i32 to index
    %c0_72 = arith.constant 0 : index
    %252 = vector.load %arg15[%251, %c0_72] : memref<8x64xf32, #tpu.memory_space<vmem>>, vector<1x64xf32>
    tpu.vector_store %arg15[%251, %c0_72], %250 {strides = array<i32>} : memref<8x64xf32, #tpu.memory_space<vmem>>, vector<1x64xf32>,
    %c2_i32_73 = arith.constant 2 : i32
    %253 = arith.index_cast %c2_i32_73 : i32 to index
    %c0_74 = arith.constant 0 : index
    %254 = vector.load %arg13[%253, %c0_74] : memref<8x256xf32, #tpu.memory_space<vmem>>, vector<1x256xf32>
    %cst_75 = arith.constant dense<0.000000e+00> : vector<1x256xf32>
    %255 = tpu.matmul %250, %207, %cst_75 {dimension_numbers = #tpu.dot_dimension_numbers<[1], [0], [0], [1], [0, 0, 1, 1], [], []>} : vector<1x64xf32>, vector<64x256xf32>, vector<1x256xf32> -> vector<1x256xf32>
    %256 = arith.addf %254, %255 : vector<1x256xf32>
    %257 = vector.extract_strided_slice %256 {offsets = [0, 0], sizes = [1, 192], strides = [1, 1]} : vector<1x256xf32> to vector<1x192xf32>
    %258 = arith.negf %257 : vector<1x192xf32>
    %259 = math.exp %258 : vector<1x192xf32>
    %cst_76 = arith.constant 1.000000e+00 : f32
    %260 = vector.broadcast %cst_76 : f32 to vector<1x192xf32>
    %261 = arith.addf %260, %259 : vector<1x192xf32>
    %262 = arith.divf %260, %261 : vector<1x192xf32>
    %263 = vector.extract_strided_slice %256 {offsets = [0, 192], sizes = [1, 64], strides = [1, 1]} : vector<1x256xf32> to vector<1x64xf32>
    %264 = math.tanh %263 : vector<1x64xf32>
    %265 = vector.extract_strided_slice %262 {offsets = [0, 64], sizes = [1, 64], strides = [1, 1]} : vector<1x192xf32> to vector<1x64xf32>
    %266 = arith.mulf %265, %247 : vector<1x64xf32>
    %267 = vector.extract_strided_slice %262 {offsets = [0, 0], sizes = [1, 64], strides = [1, 1]} : vector<1x192xf32> to vector<1x64xf32>
    %268 = arith.mulf %267, %264 : vector<1x64xf32>
    %269 = arith.addf %266, %268 : vector<1x64xf32>
    %270 = vector.extract_strided_slice %262 {offsets = [0, 128], sizes = [1, 64], strides = [1, 1]} : vector<1x192xf32> to vector<1x64xf32>
    %271 = math.tanh %269 : vector<1x64xf32>
    %272 = arith.mulf %270, %271 : vector<1x64xf32>
    %273 = arith.index_cast %c2_i32_73 : i32 to index
    %c0_77 = arith.constant 0 : index
    %274 = vector.load %arg15[%273, %c0_77] : memref<8x64xf32, #tpu.memory_space<vmem>>, vector<1x64xf32>
    tpu.vector_store %arg15[%273, %c0_77], %272 {strides = array<i32>} : memref<8x64xf32, #tpu.memory_space<vmem>>, vector<1x64xf32>,
    %c3_i32_78 = arith.constant 3 : i32
    %275 = arith.index_cast %c3_i32_78 : i32 to index
    %c0_79 = arith.constant 0 : index
    %276 = vector.load %arg13[%275, %c0_79] : memref<8x256xf32, #tpu.memory_space<vmem>>, vector<1x256xf32>
    %cst_80 = arith.constant dense<0.000000e+00> : vector<1x256xf32>
    %277 = tpu.matmul %272, %207, %cst_80 {dimension_numbers = #tpu.dot_dimension_numbers<[1], [0], [0], [1], [0, 0, 1, 1], [], []>} : vector<1x64xf32>, vector<64x256xf32>, vector<1x256xf32> -> vector<1x256xf32>
    %278 = arith.addf %276, %277 : vector<1x256xf32>
    %279 = vector.extract_strided_slice %278 {offsets = [0, 0], sizes = [1, 192], strides = [1, 1]} : vector<1x256xf32> to vector<1x192xf32>
    %280 = arith.negf %279 : vector<1x192xf32>
    %281 = math.exp %280 : vector<1x192xf32>
    %cst_81 = arith.constant 1.000000e+00 : f32
    %282 = vector.broadcast %cst_81 : f32 to vector<1x192xf32>
    %283 = arith.addf %282, %281 : vector<1x192xf32>
    %284 = arith.divf %282, %283 : vector<1x192xf32>
    %285 = vector.extract_strided_slice %278 {offsets = [0, 192], sizes = [1, 64], strides = [1, 1]} : vector<1x256xf32> to vector<1x64xf32>
    %286 = math.tanh %285 : vector<1x64xf32>
    %287 = vector.extract_strided_slice %284 {offsets = [0, 64], sizes = [1, 64], strides = [1, 1]} : vector<1x192xf32> to vector<1x64xf32>
    %288 = arith.mulf %287, %269 : vector<1x64xf32>
    %289 = vector.extract_strided_slice %284 {offsets = [0, 0], sizes = [1, 64], strides = [1, 1]} : vector<1x192xf32> to vector<1x64xf32>
    %290 = arith.mulf %289, %286 : vector<1x64xf32>
    %291 = arith.addf %288, %290 : vector<1x64xf32>
    %292 = vector.extract_strided_slice %284 {offsets = [0, 128], sizes = [1, 64], strides = [1, 1]} : vector<1x192xf32> to vector<1x64xf32>
    %293 = math.tanh %291 : vector<1x64xf32>
    %294 = arith.mulf %292, %293 : vector<1x64xf32>
    %295 = arith.index_cast %c3_i32_78 : i32 to index
    %c0_82 = arith.constant 0 : index
    %296 = vector.load %arg15[%295, %c0_82] : memref<8x64xf32, #tpu.memory_space<vmem>>, vector<1x64xf32>
    tpu.vector_store %arg15[%295, %c0_82], %294 {strides = array<i32>} : memref<8x64xf32, #tpu.memory_space<vmem>>, vector<1x64xf32>,
    %c4_i32_83 = arith.constant 4 : i32
    %297 = arith.index_cast %c4_i32_83 : i32 to index
    %c0_84 = arith.constant 0 : index
    %298 = vector.load %arg13[%297, %c0_84] : memref<8x256xf32, #tpu.memory_space<vmem>>, vector<1x256xf32>
    %cst_85 = arith.constant dense<0.000000e+00> : vector<1x256xf32>
    %299 = tpu.matmul %294, %207, %cst_85 {dimension_numbers = #tpu.dot_dimension_numbers<[1], [0], [0], [1], [0, 0, 1, 1], [], []>} : vector<1x64xf32>, vector<64x256xf32>, vector<1x256xf32> -> vector<1x256xf32>
    %300 = arith.addf %298, %299 : vector<1x256xf32>
    %301 = vector.extract_strided_slice %300 {offsets = [0, 0], sizes = [1, 192], strides = [1, 1]} : vector<1x256xf32> to vector<1x192xf32>
    %302 = arith.negf %301 : vector<1x192xf32>
    %303 = math.exp %302 : vector<1x192xf32>
    %cst_86 = arith.constant 1.000000e+00 : f32
    %304 = vector.broadcast %cst_86 : f32 to vector<1x192xf32>
    %305 = arith.addf %304, %303 : vector<1x192xf32>
    %306 = arith.divf %304, %305 : vector<1x192xf32>
    %307 = vector.extract_strided_slice %300 {offsets = [0, 192], sizes = [1, 64], strides = [1, 1]} : vector<1x256xf32> to vector<1x64xf32>
    %308 = math.tanh %307 : vector<1x64xf32>
    %309 = vector.extract_strided_slice %306 {offsets = [0, 64], sizes = [1, 64], strides = [1, 1]} : vector<1x192xf32> to vector<1x64xf32>
    %310 = arith.mulf %309, %291 : vector<1x64xf32>
    %311 = vector.extract_strided_slice %306 {offsets = [0, 0], sizes = [1, 64], strides = [1, 1]} : vector<1x192xf32> to vector<1x64xf32>
    %312 = arith.mulf %311, %308 : vector<1x64xf32>
    %313 = arith.addf %310, %312 : vector<1x64xf32>
    %314 = vector.extract_strided_slice %306 {offsets = [0, 128], sizes = [1, 64], strides = [1, 1]} : vector<1x192xf32> to vector<1x64xf32>
    %315 = math.tanh %313 : vector<1x64xf32>
    %316 = arith.mulf %314, %315 : vector<1x64xf32>
    %317 = arith.index_cast %c4_i32_83 : i32 to index
    %c0_87 = arith.constant 0 : index
    %318 = vector.load %arg15[%317, %c0_87] : memref<8x64xf32, #tpu.memory_space<vmem>>, vector<1x64xf32>
    tpu.vector_store %arg15[%317, %c0_87], %316 {strides = array<i32>} : memref<8x64xf32, #tpu.memory_space<vmem>>, vector<1x64xf32>,
    %c5_i32_88 = arith.constant 5 : i32
    %319 = arith.index_cast %c5_i32_88 : i32 to index
    %c0_89 = arith.constant 0 : index
    %320 = vector.load %arg13[%319, %c0_89] : memref<8x256xf32, #tpu.memory_space<vmem>>, vector<1x256xf32>
    %cst_90 = arith.constant dense<0.000000e+00> : vector<1x256xf32>
    %321 = tpu.matmul %316, %207, %cst_90 {dimension_numbers = #tpu.dot_dimension_numbers<[1], [0], [0], [1], [0, 0, 1, 1], [], []>} : vector<1x64xf32>, vector<64x256xf32>, vector<1x256xf32> -> vector<1x256xf32>
    %322 = arith.addf %320, %321 : vector<1x256xf32>
    %323 = vector.extract_strided_slice %322 {offsets = [0, 0], sizes = [1, 192], strides = [1, 1]} : vector<1x256xf32> to vector<1x192xf32>
    %324 = arith.negf %323 : vector<1x192xf32>
    %325 = math.exp %324 : vector<1x192xf32>
    %cst_91 = arith.constant 1.000000e+00 : f32
    %326 = vector.broadcast %cst_91 : f32 to vector<1x192xf32>
    %327 = arith.addf %326, %325 : vector<1x192xf32>
    %328 = arith.divf %326, %327 : vector<1x192xf32>
    %329 = vector.extract_strided_slice %322 {offsets = [0, 192], sizes = [1, 64], strides = [1, 1]} : vector<1x256xf32> to vector<1x64xf32>
    %330 = math.tanh %329 : vector<1x64xf32>
    %331 = vector.extract_strided_slice %328 {offsets = [0, 64], sizes = [1, 64], strides = [1, 1]} : vector<1x192xf32> to vector<1x64xf32>
    %332 = arith.mulf %331, %313 : vector<1x64xf32>
    %333 = vector.extract_strided_slice %328 {offsets = [0, 0], sizes = [1, 64], strides = [1, 1]} : vector<1x192xf32> to vector<1x64xf32>
    %334 = arith.mulf %333, %330 : vector<1x64xf32>
    %335 = arith.addf %332, %334 : vector<1x64xf32>
    %336 = vector.extract_strided_slice %328 {offsets = [0, 128], sizes = [1, 64], strides = [1, 1]} : vector<1x192xf32> to vector<1x64xf32>
    %337 = math.tanh %335 : vector<1x64xf32>
    %338 = arith.mulf %336, %337 : vector<1x64xf32>
    %339 = arith.index_cast %c5_i32_88 : i32 to index
    %c0_92 = arith.constant 0 : index
    %340 = vector.load %arg15[%339, %c0_92] : memref<8x64xf32, #tpu.memory_space<vmem>>, vector<1x64xf32>
    tpu.vector_store %arg15[%339, %c0_92], %338 {strides = array<i32>} : memref<8x64xf32, #tpu.memory_space<vmem>>, vector<1x64xf32>,
    %c6_i32_93 = arith.constant 6 : i32
    %341 = arith.index_cast %c6_i32_93 : i32 to index
    %c0_94 = arith.constant 0 : index
    %342 = vector.load %arg13[%341, %c0_94] : memref<8x256xf32, #tpu.memory_space<vmem>>, vector<1x256xf32>
    %cst_95 = arith.constant dense<0.000000e+00> : vector<1x256xf32>
    %343 = tpu.matmul %338, %207, %cst_95 {dimension_numbers = #tpu.dot_dimension_numbers<[1], [0], [0], [1], [0, 0, 1, 1], [], []>} : vector<1x64xf32>, vector<64x256xf32>, vector<1x256xf32> -> vector<1x256xf32>
    %344 = arith.addf %342, %343 : vector<1x256xf32>
    %345 = vector.extract_strided_slice %344 {offsets = [0, 0], sizes = [1, 192], strides = [1, 1]} : vector<1x256xf32> to vector<1x192xf32>
    %346 = arith.negf %345 : vector<1x192xf32>
    %347 = math.exp %346 : vector<1x192xf32>
    %cst_96 = arith.constant 1.000000e+00 : f32
    %348 = vector.broadcast %cst_96 : f32 to vector<1x192xf32>
    %349 = arith.addf %348, %347 : vector<1x192xf32>
    %350 = arith.divf %348, %349 : vector<1x192xf32>
    %351 = vector.extract_strided_slice %344 {offsets = [0, 192], sizes = [1, 64], strides = [1, 1]} : vector<1x256xf32> to vector<1x64xf32>
    %352 = math.tanh %351 : vector<1x64xf32>
    %353 = vector.extract_strided_slice %350 {offsets = [0, 64], sizes = [1, 64], strides = [1, 1]} : vector<1x192xf32> to vector<1x64xf32>
    %354 = arith.mulf %353, %335 : vector<1x64xf32>
    %355 = vector.extract_strided_slice %350 {offsets = [0, 0], sizes = [1, 64], strides = [1, 1]} : vector<1x192xf32> to vector<1x64xf32>
    %356 = arith.mulf %355, %352 : vector<1x64xf32>
    %357 = arith.addf %354, %356 : vector<1x64xf32>
    %358 = vector.extract_strided_slice %350 {offsets = [0, 128], sizes = [1, 64], strides = [1, 1]} : vector<1x192xf32> to vector<1x64xf32>
    %359 = math.tanh %357 : vector<1x64xf32>
    %360 = arith.mulf %358, %359 : vector<1x64xf32>
    %361 = arith.index_cast %c6_i32_93 : i32 to index
    %c0_97 = arith.constant 0 : index
    %362 = vector.load %arg15[%361, %c0_97] : memref<8x64xf32, #tpu.memory_space<vmem>>, vector<1x64xf32>
    tpu.vector_store %arg15[%361, %c0_97], %360 {strides = array<i32>} : memref<8x64xf32, #tpu.memory_space<vmem>>, vector<1x64xf32>,
    %c7_i32_98 = arith.constant 7 : i32
    %363 = arith.index_cast %c7_i32_98 : i32 to index
    %c0_99 = arith.constant 0 : index
    %364 = vector.load %arg13[%363, %c0_99] : memref<8x256xf32, #tpu.memory_space<vmem>>, vector<1x256xf32>
    %cst_100 = arith.constant dense<0.000000e+00> : vector<1x256xf32>
    %365 = tpu.matmul %360, %207, %cst_100 {dimension_numbers = #tpu.dot_dimension_numbers<[1], [0], [0], [1], [0, 0, 1, 1], [], []>} : vector<1x64xf32>, vector<64x256xf32>, vector<1x256xf32> -> vector<1x256xf32>
    %366 = arith.addf %364, %365 : vector<1x256xf32>
    %367 = vector.extract_strided_slice %366 {offsets = [0, 0], sizes = [1, 192], strides = [1, 1]} : vector<1x256xf32> to vector<1x192xf32>
    %368 = arith.negf %367 : vector<1x192xf32>
    %369 = math.exp %368 : vector<1x192xf32>
    %cst_101 = arith.constant 1.000000e+00 : f32
    %370 = vector.broadcast %cst_101 : f32 to vector<1x192xf32>
    %371 = arith.addf %370, %369 : vector<1x192xf32>
    %372 = arith.divf %370, %371 : vector<1x192xf32>
    %373 = vector.extract_strided_slice %366 {offsets = [0, 192], sizes = [1, 64], strides = [1, 1]} : vector<1x256xf32> to vector<1x64xf32>
    %374 = math.tanh %373 : vector<1x64xf32>
    %375 = vector.extract_strided_slice %372 {offsets = [0, 64], sizes = [1, 64], strides = [1, 1]} : vector<1x192xf32> to vector<1x64xf32>
    %376 = arith.mulf %375, %357 : vector<1x64xf32>
    %377 = vector.extract_strided_slice %372 {offsets = [0, 0], sizes = [1, 64], strides = [1, 1]} : vector<1x192xf32> to vector<1x64xf32>
    %378 = arith.mulf %377, %374 : vector<1x64xf32>
    %379 = arith.addf %376, %378 : vector<1x64xf32>
    %380 = vector.extract_strided_slice %372 {offsets = [0, 128], sizes = [1, 64], strides = [1, 1]} : vector<1x192xf32> to vector<1x64xf32>
    %381 = math.tanh %379 : vector<1x64xf32>
    %382 = arith.mulf %380, %381 : vector<1x64xf32>
    %383 = arith.index_cast %c7_i32_98 : i32 to index
    %c0_102 = arith.constant 0 : index
    %384 = vector.load %arg15[%383, %c0_102] : memref<8x64xf32, #tpu.memory_space<vmem>>, vector<1x64xf32>
    tpu.vector_store %arg15[%383, %c0_102], %382 {strides = array<i32>} : memref<8x64xf32, #tpu.memory_space<vmem>>, vector<1x64xf32>,
    %c8_i32_103 = arith.constant 8 : i32
    %c0_104 = arith.constant 0 : index
    %c0_105 = arith.constant 0 : index
    %385 = vector.load %arg15[%c0_104, %c0_105] : memref<8x64xf32, #tpu.memory_space<vmem>>, vector<8x64xf32>
    %cst_106 = arith.constant dense<0.000000e+00> : vector<8x64xf32>
    %386 = tpu.matmul %6, %385, %cst_106 {dimension_numbers = #tpu.dot_dimension_numbers<[1], [0], [0], [1], [0, 0, 1, 1], [], []>} : vector<8x8xf32>, vector<8x64xf32>, vector<8x64xf32> -> vector<8x64xf32>
    %c0_107 = arith.constant 0 : index
    %c0_108 = arith.constant 0 : index
    %387 = vector.load %arg9[%c0_107, %c0_108] : memref<64x1xf32, #tpu.memory_space<vmem>>, vector<64x1xf32>
    %cst_109 = arith.constant dense<0.000000e+00> : vector<8x1xf32>
    %388 = tpu.matmul %385, %387, %cst_109 {dimension_numbers = #tpu.dot_dimension_numbers<[1], [0], [0], [1], [0, 0, 1, 1], [], []>} : vector<8x64xf32>, vector<64x1xf32>, vector<8x1xf32> -> vector<8x1xf32>
    %c0_110 = arith.constant 0 : index
    %c0_111 = arith.constant 0 : index
    %389 = vector.load %arg10[%c0_110, %c0_111] : memref<64x1xf32, #tpu.memory_space<vmem>>, vector<64x1xf32>
    %cst_112 = arith.constant dense<0.000000e+00> : vector<8x1xf32>
    %390 = tpu.matmul %386, %389, %cst_112 {dimension_numbers = #tpu.dot_dimension_numbers<[1], [0], [0], [1], [0, 0, 1, 1], [], []>} : vector<8x64xf32>, vector<64x1xf32>, vector<8x1xf32> -> vector<8x1xf32>
    %391 = arith.addf %388, %390 : vector<8x1xf32>
    %c0_113 = arith.constant 0 : index
    %c0_114 = arith.constant 0 : index
    %392 = vector.load %arg11[%c0_113, %c0_114] : memref<1x1xf32, #tpu.memory_space<vmem>>, vector<1x1xf32>
    %393 = vector.broadcast %392 : vector<1x1xf32> to vector<8x1xf32>
    %394 = arith.addf %391, %393 : vector<8x1xf32>
    %395 = arith.negf %394 : vector<8x1xf32>
    %396 = math.exp %395 : vector<8x1xf32>
    %cst_115 = arith.constant 1.000000e+00 : f32
    %397 = vector.broadcast %cst_115 : f32 to vector<8x1xf32>
    %398 = arith.addf %397, %396 : vector<8x1xf32>
    %399 = arith.divf %397, %398 : vector<8x1xf32>
    %c0_116 = arith.constant 0 : index
    %c0_117 = arith.constant 0 : index
    %400 = vector.load %arg12[%c0_116, %c0_117] : memref<8x1xf32, #tpu.memory_space<vmem>>, vector<8x1xf32>
    tpu.vector_store %arg12[%c0_116, %c0_117], %399 {strides = array<i32>} : memref<8x1xf32, #tpu.memory_space<vmem>>, vector<8x1xf32>,
    return
  }
}

</mosaic_0001>

<bundles_post_ra>
// kernel: slstm_forward.1
= control target key start
LH: loop header
LB: loop body
LE: loop exit
PB: predicated region body
PF: predicated region fallthrough
CT: control target
= control target key end

     0   :  { %s3099_s0 = inlined_call_operand.hbm [shape: f32[8,64], index: 0, kind: input, shape index: {}]   ;;  %s3100_s1 = inlined_call_operand.vmem [shape: f32[64,256], index: 1, kind: input, shape index: {}]   ;;  %s3101_s2 = inlined_call_operand.hbm [shape: f32[64,256], index: 2, kind: input, shape index: {}]   ;;  %s3102_s3 = inlined_call_operand.vmem [shape: f32[1,256], index: 3, kind: input, shape index: {}]   ;;  %s3103_s4 = inlined_call_operand.hbm [shape: f32[64,256], index: 4, kind: input, shape index: {}]   ;;  %s3104_s5 = inlined_call_operand.hbm [shape: f32[64,256], index: 5, kind: input, shape index: {}]   ;;  %s3105_s6 = inlined_call_operand.hbm [shape: f32[64,256], index: 6, kind: input, shape index: {}]   ;;  %s3106_s7 = inlined_call_operand.vmem [shape: f32[1,256], index: 7, kind: input, shape index: {}]   ;;  %s3107_s8 = inlined_call_operand.hbm [shape: f32[64,256], index: 8, kind: input, shape index: {}]   ;;  %s3108_s9 = inlined_call_operand.vmem [shape: f32[64,1], index: 9, kind: input, shape index: {}]   ;;  %s3109_s10 = inlined_call_operand.vmem [shape: f32[64,1], index: 10, kind: input, shape index: {}]   ;;  %s3110_s11 = inlined_call_operand.<no memory space> [shape: f32[1,1], index: 11, kind: input, shape index: {}]   ;;  %s3111_s12 = inlined_call_operand.vmem [shape: f32[8,1], index: 12, kind: output, shape index: {}]  }
   0x1   :  { %v17_v0 = vstv %s3110_s11 }
   0x2   :  { %18 = vst [vmem:[#allocation5] sm:$0x1] %v17_v0 }
   0x3   :  { %19 = vsyncpa [#allocation7], 0 }
   0x4   :  { %20 = vsyncpa [#allocation9], 0 }
   0x5   :  { %21 = vsyncpa [#allocation12], 0  ;;  %s40_s25 = sshll.u32 %s3101_s2, 4  ;;  %s41_s25 = int_to_ptr.hbm [resolvable:$true] %s40_s25 }
   0x6   :  { %22 = vsyncpa [#allocation15], 0  ;;  %s2427_s26 = smov [#allocation8]   ;;  %s68_s30 = sshll.u32 %s3104_s5, 4  ;;  %s69_s30 = int_to_ptr.hbm [resolvable:$true] %s68_s30 }
   0x7   :  { %s42_s27 = sshll.u32 %s2427_s26, 4  ;;  %s2428_s13 = smov 256   ;;  %s43_s27 = int_to_ptr.vmem [resolvable:$true] %s42_s27 }
   0x8   :  { %s2429_s14 = smov 16   ;;  %s2430_s11 = smov [#allocation11]  }
   0x9   :  { %48 = dma.hbm_to_vmem [thread:$0]  %s41_s25, 2048, %s43_s27, [#allocation9], %s2428_s13, %s2428_s13, %s2429_s14  }
   0xa   :  { %s70_s15 = sshll.u32 %s2430_s11, 4  ;;  %s28_s17 = sshll.u32 %s3099_s0, 4  ;;  %s71_s15 = int_to_ptr.vmem [resolvable:$true] %s70_s15  ;;  %s29_s17 = int_to_ptr.hbm [resolvable:$true] %s28_s17 }
   0xb   :  { %76 = dma.hbm_to_vmem [thread:$0]  %s69_s30, 2048, %s71_s15, [#allocation12], %s2428_s13, %s2428_s13, %s2429_s14  }
   0xc   :  { %s55_s19 = sshll.u32 %s3103_s4, 4  ;;  %s2431_s20 = smov [#allocation6]   ;;  %s56_s19 = int_to_ptr.hbm [resolvable:$true] %s55_s19 }
   0xd   :  { %s30_s21 = sshll.u32 %s2431_s20, 4  ;;  %s2432_s22 = smov [#allocation10]   ;;  %s31_s21 = int_to_ptr.vmem [resolvable:$true] %s30_s21 }
   0xe   :  { %33 = dma.hbm_to_vmem [thread:$0]  %s29_s17, 128, %s31_s21, [#allocation7]  }
   0xf   :  { %s57_s23 = sshll.u32 %s2432_s22, 4  ;;  %s81_s0 = sshll.u32 %s3105_s6, 4  ;;  %s58_s23 = int_to_ptr.vmem [resolvable:$true] %s57_s23  ;;  %s82_s0 = int_to_ptr.hbm [resolvable:$true] %s81_s0 }
  0x10   :  { %63 = dma.hbm_to_vmem [thread:$0]  %s56_s19, 2048, %s58_s23, [#allocation9], %s2428_s13, %s2428_s13, %s2429_s14  }
  0x11   :  { %s96_s4 = sshll.u32 %s3107_s8, 4  ;;  %s2433_s28 = smov [#allocation13]   ;;  %s97_s4 = int_to_ptr.hbm [resolvable:$true] %s96_s4 }
  0x12   :  { %s83_s29 = sshll.u32 %s2433_s28, 4  ;;  %s2434_s30 = smov [#allocation14]   ;;  %s84_s29 = int_to_ptr.vmem [resolvable:$true] %s83_s29 }
  0x13   :  { %89 = dma.hbm_to_vmem [thread:$0]  %s82_s0, 2048, %s84_s29, [#allocation12], %s2428_s13, %s2428_s13, %s2429_s14  }
  0x14   :  { %s98_s6 = sshll.u32 %s2434_s30, 4  ;;  %s99_s6 = int_to_ptr.vmem [resolvable:$true] %s98_s6 }
  0x15   :  { %104 = dma.hbm_to_vmem [thread:$0]  %s97_s4, 2048, %s99_s6, [#allocation15], %s2428_s13, %s2428_s13, %s2429_s14  }
  0x16   :  { %2419 = dma.done.wait [#allocation7], 128  }
  0x17   :  { %2420 = vsyncadd [#allocation7], 4294967168 }
  0x18   :  { %2421 = dma.done.wait [#allocation9], 4096  }
  0x19   :  { %2422 = vsyncadd [#allocation9], 4294963200 }
  0x1a   :  { %2423 = dma.done.wait [#allocation12], 4096  }
  0x1b   :  { %2424 = vsyncadd [#allocation12], 4294963200 }
  0x1c   :  { %2425 = dma.done.wait [#allocation15], 2048  }
  0x1d   :  { %2426 = vsyncadd [#allocation15], 4294965248  ;;  %v135_v1 = vlaneseq  ;;  %vm144_vm1 = vcmask 64512   ;;  %v2538_v5 = vld [vmem:[#allocation6] sm:$0xff]  ;;  %v2435_v6 = vmov 0.0   ;;  %v182_v9 = vld [vmem:[%s3100_s1 + $0x70] sm:$0xff] }
  0x1e   :  { %v199_v8 = vld [vmem:[#allocation8 + $0x78] sm:$0xff]  ;;  %163 = vmatpush.msra.mxu1 %v2538_v5  ;;  %v197_v10 = vld [vmem:[#allocation8 + $0x68] sm:$0xff]  ;;  %255 = vmatpush.msra.mxu3 %v182_v9  ;;  %v198_v13 = vld [vmem:[#allocation8 + $0x70] sm:$0xff]  ;;  %vm200_vm2 = vcmask 523264   ;;  %vm360_vm3 = vcmask 1040384   ;;  %vm405_vm8 = vcmask 516096  }
  0x1f   :  { %v136_v2 = vshrl.u32 %v135_v1, 7  ;;  %v138_v3 = vand.u32 127, %v135_v1  ;;  %232 = vmatpush.msra.mxu2 %v199_v8  ;;  %v180_v11 = vld [vmem:[%s3100_s1 + $0x60] sm:$0xff]  ;;  %v178_v14 = vld [vmem:[%s3100_s1 + $0x50] sm:$0xff]  ;;  %v183_v21 = vld [vmem:[%s3100_s1 + $0x78] sm:$0xff] }
  0x20   :  { %v195_v12 = vld [vmem:[#allocation8 + $0x58] sm:$0xff]  ;;  %212 = vmatpush.msrb.mxu1 %v198_v13  ;;  %v196_v15 = vld [vmem:[#allocation8 + $0x60] sm:$0xff]  ;;  %256 = vmatpush.msra.mxu3 %v180_v11  ;;  %v193_v16 = vld [vmem:[#allocation8 + $0x48] sm:$0xff] }
  0x21   :  { %v139_v4 = vadd.s32 %v138_v3, %v136_v2  ;;  %233 = vmatpush.msra.mxu2 %v197_v10  ;;  %v194_v17 = vld [vmem:[#allocation8 + $0x50] sm:$0xff]  ;;  %v191_v19 = vld [vmem:[#allocation8 + $0x38] sm:$0xff]  ;;  %v192_v20 = vld [vmem:[#allocation8 + $0x40] sm:$0xff]  ;;  %275 = vmatpush.msra.mxu0 %v183_v21 }
  0x22   :  { %v176_v18 = vld [vmem:[%s3100_s1 + $0x40] sm:$0xff]  ;;  %213 = vmatpush.msrb.mxu1 %v196_v15  ;;  %257 = vmatpush.msra.mxu3 %v178_v14  ;;  %v174_v22 = vld [vmem:[%s3100_s1 + $0x30] sm:$0xff]  ;;  %v181_v23 = vld [vmem:[%s3100_s1 + $0x68] sm:$0xff] }
  0x23   :  { %vm140_vm0 = vcmp.eq.s32.totalorder %v139_v4, 7  ;;  %234 = vmatpush.msra.mxu2 %v195_v12  ;;  %v189_v24 = vld [vmem:[#allocation8 + $0x28] sm:$0xff]  ;;  %v190_v25 = vld [vmem:[#allocation8 + $0x30] sm:$0xff]  ;;  %v187_v28 = vld [vmem:[#allocation8 + $0x18] sm:$0xff]  ;;  %276 = vmatpush.msra.mxu0 %v181_v23 }
  0x24   :  { %v2541_v7 = vsel %vm140_vm0, 1.0, %v2435_v6  ;;  %214 = vmatpush.msrb.mxu1 %v194_v17  ;;  %258 = vmatpush.msra.mxu3 %v176_v18  ;;  %v172_v26 = vld [vmem:[%s3100_s1 + $0x20] sm:$0xff]  ;;  %v179_v27 = vld [vmem:[%s3100_s1 + $0x58] sm:$0xff]  ;;  %v188_v29 = vld [vmem:[#allocation8 + $0x20] sm:$0xff] }
  0x25   :  { %2074 = vmatmul.msk.f32.vlgmr.msra.gmra.mxu1 %vm144_vm1, %v2541_v7  ;;  %235 = vmatpush.msra.mxu2 %v193_v16  ;;  %v170_v30 = vld [vmem:[%s3100_s1 + $0x10] sm:$0xff]  ;;  %v177_v31 = vld [vmem:[%s3100_s1 + $0x48] sm:$0xff]  ;;  %v186_v33 = vld [vmem:[#allocation8 + $0x10] sm:$0xff] }
  0x26   :  { %215 = vmatpush.msrb.mxu1 %v192_v20  ;;  %259 = vmatpush.msra.mxu3 %v174_v22  ;;  %v185_v32 = vld [vmem:[#allocation8 + $0x8] sm:$0xff]  ;;  %v168_v34 = vld [vmem:[%s3100_s1] sm:$0xff]  ;;  %v184_v38 = vld [vmem:[#allocation8] sm:$0xff] }
  0x27   :  { %236 = vmatpush.msra.mxu2 %v191_v19  ;;  %277 = vmatpush.msra.mxu0 %v179_v27  ;;  %v2582_v35 = vld [vmem:[#allocation10 + $0x78] sm:$0xff]  ;;  %v2584_v36 = vld [vmem:[#allocation10 + $0x68] sm:$0xff]  ;;  %v2602_v42 = vld [vmem:[#allocation10 + $0x70] sm:$0xff] }
  0x28   :  { %216 = vmatpush.msrb.mxu1 %v190_v25  ;;  %260 = vmatpush.msra.mxu3 %v172_v26  ;;  %v2589_v37 = vld [vmem:[#allocation10 + $0x58] sm:$0xff]  ;;  %v175_v39 = vld [vmem:[%s3100_s1 + $0x38] sm:$0xff]  ;;  %v2610_v45 = vld [vmem:[#allocation10 + $0x60] sm:$0xff] }
  0x29   :  { %237 = vmatpush.msra.mxu2 %v189_v24  ;;  %278 = vmatpush.msra.mxu0 %v177_v31  ;;  %v2596_v40 = vld [vmem:[#allocation10 + $0x48] sm:$0xff]  ;;  %v173_v41 = vld [vmem:[%s3100_s1 + $0x28] sm:$0xff]  ;;  %v2618_v48 = vld [vmem:[#allocation10 + $0x50] sm:$0xff] }
  0x2a   :  { %217 = vmatpush.msrb.mxu1 %v188_v29  ;;  %261 = vmatpush.msra.mxu3 %v170_v30  ;;  %v2604_v43 = vld [vmem:[#allocation10 + $0x38] sm:$0xff]  ;;  %v171_v44 = vld [vmem:[%s3100_s1 + $0x18] sm:$0xff]  ;;  %v2625_v50 = vld [vmem:[#allocation10 + $0x40] sm:$0xff] }
  0x2b   :  { %238 = vmatpush.msra.mxu2 %v187_v28  ;;  %279 = vmatpush.msra.mxu0 %v175_v39  ;;  %v2612_v46 = vld [vmem:[#allocation10 + $0x28] sm:$0xff]  ;;  %v169_v47 = vld [vmem:[%s3100_s1 + $0x8] sm:$0xff]  ;;  %v2637_v52 = vld [vmem:[#allocation10 + $0x30] sm:$0xff] }
  0x2c   :  { %218 = vmatpush.msrb.mxu1 %v186_v33  ;;  %262 = vmatpush.msra.mxu3 %v168_v34  ;;  %v2622_v49 = vld [vmem:[#allocation10 + $0x18] sm:$0xff]  ;;  %v2629_v51 = vld [vmem:[#allocation10 + $0x8] sm:$0xff]  ;;  %v2639_v53 = vld [vmem:[#allocation10 + $0x20] sm:$0xff] }
  0x2d   :  { %239 = vmatpush.msra.mxu2 %v185_v32  ;;  %2077 = vmatmul.msk.f32.vlgmr.msra.gmra.mxu3 %vm200_vm2, %v2538_v5  ;;  %v2644_v54 = vld [vmem:[#allocation10 + $0x10] sm:$0xff]  ;;  %v2649_v55 = vld [vmem:[#allocation10] sm:$0xff] }
  0x2e   :  { %219 = vmatpush.msrb.mxu1 %v184_v38  ;;  %280 = vmatpush.msra.mxu0 %v173_v41  ;;  %v287_v57 = vld [vmem:[%s3102_s3] sm:$0x3]  ;;  %s2436_s3 = smov 64  }
  0x2f   :  { %345 = vmatpush.msrb.mxu2 %v2582_v35  ;;  %420 = vmatpush.msrb.mxu3 %v2602_v42  ;;  %v289_v59 = vperm.slane %v287_v57, 0  ;;  %v290_v0 = vperm.slane %v287_v57, 1 }
  0x30   :  { %325 = vmatpush.msra.mxu1 %v2602_v42  ;;  %281 = vmatpush.msra.mxu0 %v171_v44 }
  0x31   :  { %346 = vmatpush.msrb.mxu2 %v2584_v36  ;;  %421 = vmatpush.msrb.mxu3 %v2610_v45 }
  0x32   :  { %326 = vmatpush.msra.mxu1 %v2610_v45  ;;  %282 = vmatpush.msra.mxu0 %v169_v47 }
  0x33   :  { %347 = vmatpush.msrb.mxu2 %v2589_v37  ;;  %2078 = vmatmul.msk.f32.vlgmr.msra.gmra.mxu0 %vm200_vm2, %v2538_v5 }
  0x34   :  { %327 = vmatpush.msra.mxu1 %v2618_v48  ;;  %440 = vmatpush.msrb.mxu0 %v2582_v35 }
  0x35   :  { %348 = vmatpush.msrb.mxu2 %v2596_v40  ;;  %422 = vmatpush.msrb.mxu3 %v2618_v48 }
  0x36   :  { %328 = vmatpush.msra.mxu1 %v2625_v50  ;;  %441 = vmatpush.msrb.mxu0 %v2584_v36 }
  0x37   :  { %349 = vmatpush.msrb.mxu2 %v2604_v43  ;;  %423 = vmatpush.msrb.mxu3 %v2625_v50 }
  0x38   :  { %329 = vmatpush.msra.mxu1 %v2637_v52  ;;  %442 = vmatpush.msrb.mxu0 %v2589_v37 }
  0x39   :  { %350 = vmatpush.msrb.mxu2 %v2612_v46  ;;  %424 = vmatpush.msrb.mxu3 %v2637_v52 }
  0x3a   :  { %330 = vmatpush.msra.mxu1 %v2639_v53  ;;  %443 = vmatpush.msrb.mxu0 %v2596_v40 }
  0x3b   :  { %351 = vmatpush.msrb.mxu2 %v2622_v49  ;;  %425 = vmatpush.msrb.mxu3 %v2639_v53 }
  0x3c   :  { %331 = vmatpush.msra.mxu1 %v2644_v54  ;;  %444 = vmatpush.msrb.mxu0 %v2604_v43 }
  0x3d   :  { %352 = vmatpush.msrb.mxu2 %v2629_v51  ;;  %426 = vmatpush.msrb.mxu3 %v2644_v54 }
  0x3e   :  { %332 = vmatpush.msra.mxu1 %v2649_v55  ;;  %445 = vmatpush.msrb.mxu0 %v2612_v46 }
  0x3f   :  { %427 = vmatpush.msrb.mxu3 %v2649_v55 }
  0x40   :  { %446 = vmatpush.msrb.mxu0 %v2622_v49 }
  0x41   :  { %606 = vmatpush.msra.mxu3 %v2602_v42 }
  0x42   :  { %447 = vmatpush.msrb.mxu0 %v2629_v51 }
  0x43   :  { %607 = vmatpush.msra.mxu3 %v2610_v45 }
  0x44   :  { %626 = vmatpush.msra.mxu0 %v2582_v35 }
  0x45   :  { %608 = vmatpush.msra.mxu3 %v2618_v48 }
  0x46   :  { %627 = vmatpush.msra.mxu0 %v2584_v36 }
  0x47   :  { %609 = vmatpush.msra.mxu3 %v2625_v50 }
  0x48   :  { %628 = vmatpush.msra.mxu0 %v2589_v37 }
  0x49   :  { %610 = vmatpush.msra.mxu3 %v2637_v52 }
  0x4a   :  { %629 = vmatpush.msra.mxu0 %v2596_v40 }
  0x4b   :  { %611 = vmatpush.msra.mxu3 %v2639_v53 }
  0x4c   :  { %630 = vmatpush.msra.mxu0 %v2604_v43 }
  0x4d   :  { %612 = vmatpush.msra.mxu3 %v2644_v54 }
  0x4e   :  { %631 = vmatpush.msra.mxu0 %v2612_v46 }
  0x4f   :  { %613 = vmatpush.msra.mxu3 %v2649_v55 }
  0x50   :  { %632 = vmatpush.msra.mxu0 %v2622_v49 }
  0x52   :  { %633 = vmatpush.msra.mxu0 %v2629_v51 }
  0xa2   :  { %v165_v56 = vpop.f32.mrf.mxu1 }
  0xa3   :  { %2075 = vmatmul.msk.f32.vlgmr.msrb.gmra.mxu1 %vm200_vm2, %v165_v56  ;;  %2076 = vmatmul.msk.f32.vlgmr.msra.gmra.mxu2 %vm200_vm2, %v165_v56 }
  0xa4   :  { %513 = vmatpush.msrb.mxu1 %v2602_v42  ;;  %533 = vmatpush.msra.mxu2 %v2582_v35 }
  0xa6   :  { %514 = vmatpush.msrb.mxu1 %v2610_v45  ;;  %534 = vmatpush.msra.mxu2 %v2584_v36 }
  0xa8   :  { %515 = vmatpush.msrb.mxu1 %v2618_v48  ;;  %535 = vmatpush.msra.mxu2 %v2589_v37 }
  0xaa   :  { %516 = vmatpush.msrb.mxu1 %v2625_v50  ;;  %536 = vmatpush.msra.mxu2 %v2596_v40 }
  0xab   :  { %353 = vmatmul.f32.vlgmr.msrb.gmra.mxu2 %v2435_v6  ;;  %333 = vmatmul.f32.vlgmr.msra.gmra.mxu1 %v2435_v6 }
  0xac   :  { %517 = vmatpush.msrb.mxu1 %v2637_v52  ;;  %537 = vmatpush.msra.mxu2 %v2604_v43 }
  0xae   :  { %518 = vmatpush.msrb.mxu1 %v2639_v53  ;;  %538 = vmatpush.msra.mxu2 %v2612_v46 }
  0xb0   :  { %519 = vmatpush.msrb.mxu1 %v2644_v54  ;;  %539 = vmatpush.msra.mxu2 %v2622_v49  ;;  %v264_v58 = vpop.f32.mrf.mxu3  ;;  %v284_v63 = vpop.f32.mrf.mxu0 }
  0xb2   :  { %520 = vmatpush.msrb.mxu1 %v2649_v55  ;;  %540 = vmatpush.msra.mxu2 %v2629_v51 }
  0xb4   :  { %699 = vmatpush.msra.mxu1 %v2602_v42  ;;  %719 = vmatpush.msrb.mxu2 %v2582_v35 }
  0xb6   :  { %700 = vmatpush.msra.mxu1 %v2610_v45  ;;  %720 = vmatpush.msrb.mxu2 %v2584_v36 }
  0xb8   :  { %701 = vmatpush.msra.mxu1 %v2618_v48  ;;  %721 = vmatpush.msrb.mxu2 %v2589_v37 }
  0xba   :  { %702 = vmatpush.msra.mxu1 %v2625_v50  ;;  %722 = vmatpush.msrb.mxu2 %v2596_v40 }
  0xbc   :  { %703 = vmatpush.msra.mxu1 %v2637_v52  ;;  %723 = vmatpush.msrb.mxu2 %v2604_v43 }
  0xbe   :  { %704 = vmatpush.msra.mxu1 %v2639_v53  ;;  %724 = vmatpush.msrb.mxu2 %v2612_v46 }
  0xc0   :  { %705 = vmatpush.msra.mxu1 %v2644_v54  ;;  %725 = vmatpush.msrb.mxu2 %v2622_v49 }
  0xc2   :  { %706 = vmatpush.msra.mxu1 %v2649_v55  ;;  %726 = vmatpush.msrb.mxu2 %v2629_v51 }
 0x120   :  { %v221_v60 = vpop.f32.mrf.mxu1 }
 0x121   :  { %v265_v61 = vadd.f32 %v264_v58, %v221_v60 }
 0x123   :  { %v293_v62 = vadd.f32 %v289_v59, %v265_v61 }
 0x125   :  { %295 = vst [vmem:[#allocation2] sm:$0xff] %v293_v62 }
 0x126   :  { %v241_v1 = vpop.f32.mrf.mxu2 }
 0x127   :  { %v285_v2 = vadd.f32 %v284_v63, %v241_v1 }
 0x128   :  { %v334_v5 = vpop.f32.mrf.mxu1 }
 0x129   :  { %v294_v3 = vadd.f32 %v290_v0, %v285_v2 }
 0x12b   :  { %296 = vst [vmem:[#allocation2 + $0x8] sm:$0xff] %v294_v3 }
 0x12e   :  { %v354_v4 = vpop.f32.mrf.mxu2 }
 0x12f   :  { %v359_v8 = vrot.slane %v354_v4, 7 }
 0x131   :  { %v361_v9 = vsel %vm360_vm3, %v334_v5, %v359_v8 }
 0x132   :  { %v313_v10 = vld [vmem:[#allocation2] ss:$8 sm:$0x3]  ;;  %v408_v47 = vld [vmem:[#allocation2 + $0x1] ss:$8 sm:$0x3] }
 0x133   :  { %v363_v11 = vadd.f32 %v361_v9, %v313_v10 }
 0x135   :  { %384 = vrot.lane.b32.xlu0 %v363_v11, %s2436_s3  ;;  %v2079_v12 = vmul.f32 -1.442695, %v363_v11 }
 0x137   :  { %2143 = vpow2.f32 %v2079_v12 }
 0x13d   :  { %v2144_v13 = vpop.eup %2143 }
 0x13e   :  { %v367_v14 = vadd.f32 1.0, %v2144_v13 }
 0x140   :  { %2145 = vrcp.f32 %v367_v14  ;;  %v379_v22 = vand.u32 2147483648, %v367_v14  ;;  %vm373_vm5 = vweird.f32 %v367_v14  ;;  %v377_v23 = vand.u32 2147483647, %v367_v14 }
 0x142   :  { %v380_v25 = vor.u32 1.1754944e-38, %v379_v22  ;;  %vm378_vm7 = vcmp.eq.f32.partialorder %v377_v23, 8.507059e+37  ;;  %v501_v23 = vld [vmem:[#allocation2 + $0x2] ss:$8 sm:$0x3] }
 0x146   :  { %v2146_v15 = vpop.eup %2145 }
 0x147   :  { %v369_v16 = vmul.f32 %v2146_v15, %v367_v14  ;;  %vm374_vm4 = vweird.f32 %v2146_v15 }
 0x148   :  { %vm375_vm6 = vmor %vm373_vm5, %vm374_vm4 }
 0x149   :  { %v370_v17 = vsub.f32 1.0, %v369_v16 }
 0x14b   :  { %v371_v18 = vmul.f32 %v2146_v15, %v370_v17 }
 0x14d   :  { %v372_v21 = vadd.f32 %v2146_v15, %v371_v18 }
 0x14f   :  { %v376_v24 = vsel %vm375_vm6, %v2146_v15, %v372_v21 }
 0x150   :  { %v381_v27 = vsel %vm378_vm7, %v380_v25, %v376_v24 }
 0x151   :  { %v389_v29 = vmul.f32 0.0, %v381_v27  ;;  %v398_v33 = vrot.slane %v381_v27, 1 }
 0x1a7   :  { %v385_v19 = vpop.permute.xlu0 %384 }
 0x1a8   :  { %v386_v20 = vrot.slane %v385_v19, 1 }
 0x1aa   :  { %2147 = vtanh.f32 %v386_v20 }
 0x1b0   :  { %v2148_v26 = vpop.eup %2147 }
 0x1b1   :  { %v390_v28 = vmul.f32 %v2148_v26, %v381_v27 }
 0x1b3   :  { %392 = vrot.lane.b32.xlu0 %v390_v28, %s2436_s3 }
 0x225   :  { %v393_v30 = vpop.permute.xlu0 %392 }
 0x226   :  { %v395_v31 = vadd.f32 %v393_v30, %v389_v29 }
 0x228   :  { %2149 = vtanh.f32 %v395_v31 }
 0x22e   :  { %v2150_v32 = vpop.eup %2149 }
 0x22f   :  { %401 = vrot.lane.b32.xlu1 %v2150_v32, %s2436_s3 }
 0x2a1   :  { %v402_v34 = vpop.permute.xlu1 %401 }
 0x2a2   :  { %v404_v38 = vmul.f32 %v402_v34, %v398_v33 }
 0x2a4   :  { %406 = vst.msk [vmem:[#allocation3] sm:$0x1] %vm405_vm8, %v404_v38  ;;  %2080 = vmatmul.msk.f32.vlgmr.msrb.gmra.mxu3 %vm200_vm2, %v404_v38  ;;  %2081 = vmatmul.msk.f32.vlgmr.msrb.gmra.mxu0 %vm200_vm2, %v404_v38 }
 0x2a5   :  { %792 = vmatpush.msrb.mxu3 %v2602_v42  ;;  %812 = vmatpush.msrb.mxu0 %v2582_v35 }
 0x2a7   :  { %793 = vmatpush.msrb.mxu3 %v2610_v45  ;;  %813 = vmatpush.msrb.mxu0 %v2584_v36 }
 0x2a9   :  { %794 = vmatpush.msrb.mxu3 %v2618_v48  ;;  %814 = vmatpush.msrb.mxu0 %v2589_v37 }
 0x2ab   :  { %795 = vmatpush.msrb.mxu3 %v2625_v50  ;;  %815 = vmatpush.msrb.mxu0 %v2596_v40 }
 0x2ad   :  { %796 = vmatpush.msrb.mxu3 %v2637_v52  ;;  %816 = vmatpush.msrb.mxu0 %v2604_v43 }
 0x2af   :  { %797 = vmatpush.msrb.mxu3 %v2639_v53  ;;  %817 = vmatpush.msrb.mxu0 %v2612_v46 }
 0x2b1   :  { %798 = vmatpush.msrb.mxu3 %v2644_v54  ;;  %818 = vmatpush.msrb.mxu0 %v2622_v49 }
 0x2b3   :  { %799 = vmatpush.msrb.mxu3 %v2649_v55  ;;  %819 = vmatpush.msrb.mxu0 %v2629_v51 }
 0x321   :  { %v449_v39 = vpop.f32.mrf.mxu0 }
 0x322   :  { %v454_v41 = vrot.slane %v449_v39, 7 }
 0x327   :  { %v429_v44 = vpop.f32.mrf.mxu3 }
 0x328   :  { %v455_v56 = vsel %vm360_vm3, %v429_v44, %v454_v41 }
 0x329   :  { %v457_v57 = vadd.f32 %v455_v56, %v408_v47 }
 0x32b   :  { %478 = vrot.lane.b32.xlu1 %v457_v57, %s2436_s3  ;;  %v2082_v58 = vmul.f32 -1.442695, %v457_v57 }
 0x32d   :  { %2151 = vpow2.f32 %v2082_v58 }
 0x333   :  { %v2152_v59 = vpop.eup %2151 }
 0x334   :  { %v461_v60 = vadd.f32 1.0, %v2152_v59 }
 0x336   :  { %2153 = vrcp.f32 %v461_v60  ;;  %v473_v4 = vand.u32 2147483648, %v461_v60  ;;  %vm467_vm10 = vweird.f32 %v461_v60  ;;  %v471_v5 = vand.u32 2147483647, %v461_v60 }
 0x338   :  { %v474_v9 = vor.u32 1.1754944e-38, %v473_v4  ;;  %vm472_vm12 = vcmp.eq.f32.partialorder %v471_v5, 8.507059e+37 }
 0x33c   :  { %v2154_v61 = vpop.eup %2153 }
 0x33d   :  { %v463_v62 = vmul.f32 %v2154_v61, %v461_v60  ;;  %vm468_vm9 = vweird.f32 %v2154_v61 }
 0x33e   :  { %vm469_vm11 = vmor %vm467_vm10, %vm468_vm9 }
 0x33f   :  { %v464_v63 = vsub.f32 1.0, %v463_v62 }
 0x341   :  { %v465_v0 = vmul.f32 %v2154_v61, %v464_v63 }
 0x343   :  { %v466_v3 = vadd.f32 %v2154_v61, %v465_v0 }
 0x345   :  { %v470_v8 = vsel %vm469_vm11, %v2154_v61, %v466_v3 }
 0x346   :  { %v475_v11 = vsel %vm472_vm12, %v474_v9, %v470_v8 }
 0x347   :  { %v483_v13 = vmul.f32 %v475_v11, %v395_v31  ;;  %v492_v17 = vrot.slane %v475_v11, 1 }
 0x39d   :  { %v479_v1 = vpop.permute.xlu1 %478 }
 0x39e   :  { %v480_v2 = vrot.slane %v479_v1, 1 }
 0x3a0   :  { %2155 = vtanh.f32 %v480_v2 }
 0x3a6   :  { %v2156_v10 = vpop.eup %2155 }
 0x3a7   :  { %v484_v12 = vmul.f32 %v2156_v10, %v475_v11 }
 0x3a9   :  { %486 = vrot.lane.b32.xlu2 %v484_v12, %s2436_s3 }
 0x403   :  { %v487_v14 = vpop.permute.xlu2 %486 }
 0x404   :  { %v489_v15 = vadd.f32 %v487_v14, %v483_v13 }
 0x406   :  { %2157 = vtanh.f32 %v489_v15 }
 0x40c   :  { %v2158_v16 = vpop.eup %2157 }
 0x40d   :  { %495 = vrot.lane.b32.xlu2 %v2158_v16, %s2436_s3 }
 0x467   :  { %v496_v18 = vpop.permute.xlu2 %495 }
 0x468   :  { %v498_v19 = vmul.f32 %v496_v18, %v492_v17 }
 0x46a   :  { %499 = vst.msk [vmem:[#allocation3 + $0x1] sm:$0x1] %vm405_vm8, %v498_v19  ;;  %2083 = vmatmul.msk.f32.vlgmr.msrb.gmra.mxu1 %vm200_vm2, %v498_v19  ;;  %2084 = vmatmul.msk.f32.vlgmr.msra.gmra.mxu2 %vm200_vm2, %v498_v19 }
 0x46b   :  { %885 = vmatpush.msrb.mxu1 %v2602_v42  ;;  %905 = vmatpush.msra.mxu2 %v2582_v35 }
 0x46d   :  { %886 = vmatpush.msrb.mxu1 %v2610_v45  ;;  %906 = vmatpush.msra.mxu2 %v2584_v36 }
 0x46f   :  { %887 = vmatpush.msrb.mxu1 %v2618_v48  ;;  %907 = vmatpush.msra.mxu2 %v2589_v37 }
 0x471   :  { %888 = vmatpush.msrb.mxu1 %v2625_v50  ;;  %908 = vmatpush.msra.mxu2 %v2596_v40 }
 0x473   :  { %889 = vmatpush.msrb.mxu1 %v2637_v52  ;;  %909 = vmatpush.msra.mxu2 %v2604_v43 }
 0x475   :  { %890 = vmatpush.msrb.mxu1 %v2639_v53  ;;  %910 = vmatpush.msra.mxu2 %v2612_v46 }
 0x477   :  { %891 = vmatpush.msrb.mxu1 %v2644_v54  ;;  %911 = vmatpush.msra.mxu2 %v2622_v49 }
 0x479   :  { %892 = vmatpush.msrb.mxu1 %v2649_v55  ;;  %912 = vmatpush.msra.mxu2 %v2629_v51 }
 0x4e7   :  { %v522_v22 = vpop.f32.mrf.mxu1 }
 0x4ed   :  { %v542_v20 = vpop.f32.mrf.mxu2 }
 0x4ee   :  { %v547_v21 = vrot.slane %v542_v20, 7 }
 0x4f0   :  { %v548_v24 = vsel %vm360_vm3, %v522_v22, %v547_v21  ;;  %v687_v21 = vld [vmem:[#allocation2 + $0x4] ss:$8 sm:$0x3] }
 0x4f1   :  { %v550_v25 = vadd.f32 %v548_v24, %v501_v23 }
 0x4f3   :  { %571 = vrot.lane.b32.xlu0 %v550_v25, %s2436_s3  ;;  %v2085_v26 = vmul.f32 -1.442695, %v550_v25 }
 0x4f5   :  { %2159 = vpow2.f32 %v2085_v26 }
 0x4fb   :  { %v2160_v27 = vpop.eup %2159 }
 0x4fc   :  { %v554_v28 = vadd.f32 1.0, %v2160_v27 }
 0x4fe   :  { %2161 = vrcp.f32 %v554_v28  ;;  %v566_v39 = vand.u32 2147483648, %v554_v28  ;;  %vm560_vm14 = vweird.f32 %v554_v28  ;;  %v564_v41 = vand.u32 2147483647, %v554_v28 }
 0x500   :  { %v567_v47 = vor.u32 1.1754944e-38, %v566_v39  ;;  %vm565_vm0 = vcmp.eq.f32.partialorder %v564_v41, 8.507059e+37 }
 0x504   :  { %v2162_v29 = vpop.eup %2161 }
 0x505   :  { %v556_v30 = vmul.f32 %v2162_v29, %v554_v28  ;;  %vm561_vm13 = vweird.f32 %v2162_v29 }
 0x506   :  { %vm562_vm15 = vmor %vm560_vm14, %vm561_vm13 }
 0x507   :  { %v557_v31 = vsub.f32 1.0, %v556_v30 }
 0x509   :  { %v558_v32 = vmul.f32 %v2162_v29, %v557_v31 }
 0x50b   :  { %v559_v38 = vadd.f32 %v2162_v29, %v558_v32 }
 0x50d   :  { %v563_v44 = vsel %vm562_vm15, %v2162_v29, %v559_v38 }
 0x50e   :  { %v568_v57 = vsel %vm565_vm0, %v567_v47, %v563_v44 }
 0x50f   :  { %v576_v59 = vmul.f32 %v568_v57, %v489_v15  ;;  %v585_v63 = vrot.slane %v568_v57, 1 }
 0x565   :  { %v572_v33 = vpop.permute.xlu0 %571 }
 0x566   :  { %v573_v34 = vrot.slane %v572_v33, 1 }
 0x568   :  { %2163 = vtanh.f32 %v573_v34 }
 0x56e   :  { %v2164_v56 = vpop.eup %2163 }
 0x56f   :  { %v577_v58 = vmul.f32 %v2164_v56, %v568_v57 }
 0x571   :  { %579 = vrot.lane.b32.xlu1 %v577_v58, %s2436_s3 }
 0x5e3   :  { %v580_v60 = vpop.permute.xlu1 %579 }
 0x5e4   :  { %v582_v61 = vadd.f32 %v580_v60, %v576_v59 }
 0x5e6   :  { %2165 = vtanh.f32 %v582_v61 }
 0x5ec   :  { %v2166_v62 = vpop.eup %2165 }
 0x5ed   :  { %588 = vrot.lane.b32.xlu2 %v2166_v62, %s2436_s3 }
 0x647   :  { %v589_v0 = vpop.permute.xlu2 %588 }
 0x648   :  { %v591_v1 = vmul.f32 %v589_v0, %v585_v63 }
 0x64a   :  { %592 = vst.msk [vmem:[#allocation3 + $0x2] sm:$0x1] %vm405_vm8, %v591_v1  ;;  %2086 = vmatmul.msk.f32.vlgmr.msra.gmra.mxu3 %vm200_vm2, %v591_v1  ;;  %2087 = vmatmul.msk.f32.vlgmr.msra.gmra.mxu0 %vm200_vm2, %v591_v1 }
 0x64b   :  { %978 = vmatpush.msra.mxu3 %v2602_v42  ;;  %998 = vmatpush.msra.mxu0 %v2582_v35 }
 0x64d   :  { %979 = vmatpush.msra.mxu3 %v2610_v45  ;;  %999 = vmatpush.msra.mxu0 %v2584_v36 }
 0x64f   :  { %980 = vmatpush.msra.mxu3 %v2618_v48  ;;  %1000 = vmatpush.msra.mxu0 %v2589_v37 }
 0x651   :  { %981 = vmatpush.msra.mxu3 %v2625_v50  ;;  %1001 = vmatpush.msra.mxu0 %v2596_v40  ;;  %v594_v40 = vld [vmem:[#allocation2 + $0x3] ss:$8 sm:$0x3] }
 0x653   :  { %982 = vmatpush.msra.mxu3 %v2637_v52  ;;  %1002 = vmatpush.msra.mxu0 %v2604_v43 }
 0x655   :  { %983 = vmatpush.msra.mxu3 %v2639_v53  ;;  %1003 = vmatpush.msra.mxu0 %v2612_v46 }
 0x657   :  { %984 = vmatpush.msra.mxu3 %v2644_v54  ;;  %1004 = vmatpush.msra.mxu0 %v2622_v49 }
 0x659   :  { %985 = vmatpush.msra.mxu3 %v2649_v55  ;;  %1005 = vmatpush.msra.mxu0 %v2629_v51 }
 0x6c7   :  { %v635_v35 = vpop.f32.mrf.mxu0 }
 0x6c8   :  { %v640_v36 = vrot.slane %v635_v35, 7 }
 0x6cd   :  { %v615_v37 = vpop.f32.mrf.mxu3 }
 0x6ce   :  { %v641_v42 = vsel %vm360_vm3, %v615_v37, %v640_v36  ;;  %v780_v36 = vld [vmem:[#allocation2 + $0x5] ss:$8 sm:$0x3] }
 0x6cf   :  { %v643_v45 = vadd.f32 %v641_v42, %v594_v40 }
 0x6d1   :  { %664 = vrot.lane.b32.xlu0 %v643_v45, %s2436_s3  ;;  %v2088_v43 = vmul.f32 -1.442695, %v643_v45 }
 0x6d3   :  { %2167 = vpow2.f32 %v2088_v43 }
 0x6d9   :  { %v2168_v46 = vpop.eup %2167 }
 0x6da   :  { %v647_v48 = vadd.f32 1.0, %v2168_v46 }
 0x6dc   :  { %2169 = vrcp.f32 %v647_v48  ;;  %v659_v2 = vand.u32 2147483648, %v647_v48  ;;  %vm653_vm5 = vweird.f32 %v647_v48  ;;  %v657_v3 = vand.u32 2147483647, %v647_v48 }
 0x6de   :  { %v660_v5 = vor.u32 1.1754944e-38, %v659_v2  ;;  %vm658_vm7 = vcmp.eq.f32.partialorder %v657_v3, 8.507059e+37 }
 0x6e2   :  { %v2170_v50 = vpop.eup %2169 }
 0x6e3   :  { %v649_v49 = vmul.f32 %v2170_v50, %v647_v48  ;;  %vm654_vm4 = vweird.f32 %v2170_v50 }
 0x6e4   :  { %vm655_vm6 = vmor %vm653_vm5, %vm654_vm4 }
 0x6e5   :  { %v650_v52 = vsub.f32 1.0, %v649_v49 }
 0x6e7   :  { %v651_v53 = vmul.f32 %v2170_v50, %v650_v52 }
 0x6e9   :  { %v652_v55 = vadd.f32 %v2170_v50, %v651_v53 }
 0x6eb   :  { %v656_v4 = vsel %vm655_vm6, %v2170_v50, %v652_v55 }
 0x6ec   :  { %v661_v9 = vsel %vm658_vm7, %v660_v5, %v656_v4 }
 0x6ed   :  { %v669_v11 = vmul.f32 %v661_v9, %v582_v61  ;;  %v678_v15 = vrot.slane %v661_v9, 1 }
 0x743   :  { %v665_v54 = vpop.permute.xlu0 %664 }
 0x744   :  { %v666_v51 = vrot.slane %v665_v54, 1 }
 0x746   :  { %2171 = vtanh.f32 %v666_v51 }
 0x74c   :  { %v2172_v8 = vpop.eup %2171 }
 0x74d   :  { %v670_v10 = vmul.f32 %v2172_v8, %v661_v9 }
 0x74f   :  { %672 = vrot.lane.b32.xlu1 %v670_v10, %s2436_s3 }
 0x7c1   :  { %v673_v12 = vpop.permute.xlu1 %672 }
 0x7c2   :  { %v675_v13 = vadd.f32 %v673_v12, %v669_v11 }
 0x7c4   :  { %2173 = vtanh.f32 %v675_v13 }
 0x7ca   :  { %v2174_v14 = vpop.eup %2173 }
 0x7cb   :  { %681 = vrot.lane.b32.xlu2 %v2174_v14, %s2436_s3 }
 0x825   :  { %v682_v16 = vpop.permute.xlu2 %681 }
 0x826   :  { %v684_v17 = vmul.f32 %v682_v16, %v678_v15 }
 0x828   :  { %685 = vst.msk [vmem:[#allocation3 + $0x3] sm:$0x1] %vm405_vm8, %v684_v17  ;;  %2089 = vmatmul.msk.f32.vlgmr.msra.gmra.mxu1 %vm200_vm2, %v684_v17  ;;  %2090 = vmatmul.msk.f32.vlgmr.msrb.gmra.mxu2 %vm200_vm2, %v684_v17 }
 0x8a5   :  { %v708_v20 = vpop.f32.mrf.mxu1 }
 0x8ab   :  { %v728_v18 = vpop.f32.mrf.mxu2 }
 0x8ac   :  { %v733_v19 = vrot.slane %v728_v18, 7 }
 0x8ae   :  { %v734_v22 = vsel %vm360_vm3, %v708_v20, %v733_v19  ;;  %v873_v19 = vld [vmem:[#allocation2 + $0x6] ss:$8 sm:$0x3] }
 0x8af   :  { %v736_v23 = vadd.f32 %v734_v22, %v687_v21 }
 0x8b1   :  { %757 = vrot.lane.b32.xlu0 %v736_v23, %s2436_s3  ;;  %v2091_v24 = vmul.f32 -1.442695, %v736_v23 }
 0x8b3   :  { %2175 = vpow2.f32 %v2091_v24 }
 0x8b9   :  { %v2176_v25 = vpop.eup %2175 }
 0x8ba   :  { %v740_v26 = vadd.f32 1.0, %v2176_v25 }
 0x8bc   :  { %2177 = vrcp.f32 %v740_v26  ;;  %v752_v34 = vand.u32 2147483648, %v740_v26  ;;  %vm746_vm10 = vweird.f32 %v740_v26  ;;  %v750_v38 = vand.u32 2147483647, %v740_v26 }
 0x8be   :  { %v753_v41 = vor.u32 1.1754944e-38, %v752_v34  ;;  %vm751_vm12 = vcmp.eq.f32.partialorder %v750_v38, 8.507059e+37 }
 0x8c2   :  { %v2178_v27 = vpop.eup %2177 }
 0x8c3   :  { %v742_v28 = vmul.f32 %v2178_v27, %v740_v26  ;;  %vm747_vm9 = vweird.f32 %v2178_v27 }
 0x8c4   :  { %vm748_vm11 = vmor %vm746_vm10, %vm747_vm9 }
 0x8c5   :  { %v743_v29 = vsub.f32 1.0, %v742_v28 }
 0x8c7   :  { %v744_v30 = vmul.f32 %v2178_v27, %v743_v29 }
 0x8c9   :  { %v745_v33 = vadd.f32 %v2178_v27, %v744_v30 }
 0x8cb   :  { %v749_v39 = vsel %vm748_vm11, %v2178_v27, %v745_v33 }
 0x8cc   :  { %v754_v47 = vsel %vm751_vm12, %v753_v41, %v749_v39 }
 0x8cd   :  { %v762_v57 = vmul.f32 %v754_v47, %v675_v13  ;;  %v771_v61 = vrot.slane %v754_v47, 1 }
 0x923   :  { %v758_v31 = vpop.permute.xlu0 %757 }
 0x924   :  { %v759_v32 = vrot.slane %v758_v31, 1 }
 0x926   :  { %2179 = vtanh.f32 %v759_v32 }
 0x92c   :  { %v2180_v44 = vpop.eup %2179 }
 0x92d   :  { %v763_v56 = vmul.f32 %v2180_v44, %v754_v47 }
 0x92f   :  { %765 = vrot.lane.b32.xlu1 %v763_v56, %s2436_s3 }
 0x9a1   :  { %v766_v58 = vpop.permute.xlu1 %765 }
 0x9a2   :  { %v768_v59 = vadd.f32 %v766_v58, %v762_v57 }
 0x9a4   :  { %2181 = vtanh.f32 %v768_v59 }
 0x9aa   :  { %v2182_v60 = vpop.eup %2181 }
 0x9ab   :  { %774 = vrot.lane.b32.xlu2 %v2182_v60, %s2436_s3 }
 0xa05   :  { %v775_v62 = vpop.permute.xlu2 %774 }
 0xa06   :  { %v777_v63 = vmul.f32 %v775_v62, %v771_v61 }
 0xa08   :  { %778 = vst.msk [vmem:[#allocation3 + $0x4] sm:$0x1] %vm405_vm8, %v777_v63  ;;  %2092 = vmatmul.msk.f32.vlgmr.msrb.gmra.mxu3 %vm200_vm2, %v777_v63  ;;  %2093 = vmatmul.msk.f32.vlgmr.msrb.gmra.mxu0 %vm200_vm2, %v777_v63 }
 0xa85   :  { %v821_v0 = vpop.f32.mrf.mxu0 }
 0xa86   :  { %v826_v1 = vrot.slane %v821_v0, 7 }
 0xa8b   :  { %v801_v35 = vpop.f32.mrf.mxu3 }
 0xa8c   :  { %v827_v37 = vsel %vm360_vm3, %v801_v35, %v826_v1  ;;  %v966_v1 = vld [vmem:[#allocation2 + $0x7] ss:$8 sm:$0x3] }
 0xa8d   :  { %v829_v40 = vadd.f32 %v827_v37, %v780_v36 }
 0xa8f   :  { %850 = vrot.lane.b32.xlu0 %v829_v40, %s2436_s3  ;;  %v2094_v42 = vmul.f32 -1.442695, %v829_v40 }
 0xa91   :  { %2183 = vpow2.f32 %v2094_v42 }
 0xa97   :  { %v2184_v45 = vpop.eup %2183 }
 0xa98   :  { %v833_v43 = vadd.f32 1.0, %v2184_v45 }
 0xa9a   :  { %2185 = vrcp.f32 %v833_v43  ;;  %v845_v51 = vand.u32 2147483648, %v833_v43  ;;  %vm839_vm14 = vweird.f32 %v833_v43  ;;  %v843_v55 = vand.u32 2147483647, %v833_v43 }
 0xa9c   :  { %v846_v3 = vor.u32 1.1754944e-38, %v845_v51  ;;  %vm844_vm0 = vcmp.eq.f32.partialorder %v843_v55, 8.507059e+37 }
 0xaa0   :  { %v2186_v46 = vpop.eup %2185 }
 0xaa1   :  { %v835_v48 = vmul.f32 %v2186_v46, %v833_v43  ;;  %vm840_vm13 = vweird.f32 %v2186_v46 }
 0xaa2   :  { %vm841_vm15 = vmor %vm839_vm14, %vm840_vm13 }
 0xaa3   :  { %v836_v50 = vsub.f32 1.0, %v835_v48 }
 0xaa5   :  { %v837_v49 = vmul.f32 %v2186_v46, %v836_v50 }
 0xaa7   :  { %v838_v54 = vadd.f32 %v2186_v46, %v837_v49 }
 0xaa9   :  { %v842_v2 = vsel %vm841_vm15, %v2186_v46, %v838_v54 }
 0xaaa   :  { %v847_v5 = vsel %vm844_vm0, %v846_v3, %v842_v2 }
 0xaab   :  { %v855_v9 = vmul.f32 %v847_v5, %v768_v59  ;;  %v864_v13 = vrot.slane %v847_v5, 1 }
 0xb01   :  { %v851_v52 = vpop.permute.xlu0 %850 }
 0xb02   :  { %v852_v53 = vrot.slane %v851_v52, 1 }
 0xb04   :  { %2187 = vtanh.f32 %v852_v53 }
 0xb0a   :  { %v2188_v4 = vpop.eup %2187 }
 0xb0b   :  { %v856_v8 = vmul.f32 %v2188_v4, %v847_v5  ;;  %v1093_v5 = vld [vmem:[#allocation11 + $0x70] sm:$0xff] }
 0xb0c   :  { %1165 = vmatpush.msrb.mxu0 %v1093_v5 }
 0xb0d   :  { %858 = vrot.lane.b32.xlu1 %v856_v8, %s2436_s3  ;;  %v1091_v8 = vld [vmem:[#allocation11 + $0x60] sm:$0xff] }
 0xb0e   :  { %1166 = vmatpush.msrb.mxu0 %v1091_v8 }
 0xb7f   :  { %v859_v10 = vpop.permute.xlu1 %858 }
 0xb80   :  { %v861_v11 = vadd.f32 %v859_v10, %v855_v9  ;;  %v1089_v9 = vld [vmem:[#allocation11 + $0x50] sm:$0xff] }
 0xb81   :  { %1167 = vmatpush.msrb.mxu0 %v1089_v9 }
 0xb82   :  { %2189 = vtanh.f32 %v861_v11 }
 0xb88   :  { %v2190_v12 = vpop.eup %2189 }
 0xb89   :  { %867 = vrot.lane.b32.xlu2 %v2190_v12, %s2436_s3 }
 0xbe3   :  { %v868_v14 = vpop.permute.xlu2 %867 }
 0xbe4   :  { %v870_v15 = vmul.f32 %v868_v14, %v864_v13  ;;  %v1087_v14 = vld [vmem:[#allocation11 + $0x40] sm:$0xff] }
 0xbe5   :  { %1168 = vmatpush.msrb.mxu0 %v1087_v14 }
 0xbe6   :  { %871 = vst.msk [vmem:[#allocation3 + $0x5] sm:$0x1] %vm405_vm8, %v870_v15  ;;  %2095 = vmatmul.msk.f32.vlgmr.msrb.gmra.mxu1 %vm200_vm2, %v870_v15  ;;  %2096 = vmatmul.msk.f32.vlgmr.msra.gmra.mxu2 %vm200_vm2, %v870_v15  ;;  %v1085_v15 = vld [vmem:[#allocation11 + $0x30] sm:$0xff] }
 0xbe7   :  { %1169 = vmatpush.msrb.mxu0 %v1085_v15 }
 0xc63   :  { %v894_v18 = vpop.f32.mrf.mxu1 }
 0xc69   :  { %v914_v16 = vpop.f32.mrf.mxu2 }
 0xc6a   :  { %v919_v17 = vrot.slane %v914_v16, 7  ;;  %v1083_v16 = vld [vmem:[#allocation11 + $0x20] sm:$0xff] }
 0xc6b   :  { %1170 = vmatpush.msrb.mxu0 %v1083_v16 }
 0xc6c   :  { %v920_v20 = vsel %vm360_vm3, %v894_v18, %v919_v17  ;;  %v1081_v17 = vld [vmem:[#allocation11 + $0x10] sm:$0xff]  ;;  %v1079_v18 = vld [vmem:[#allocation11] sm:$0xff] }
 0xc6d   :  { %v922_v21 = vadd.f32 %v920_v20, %v873_v19  ;;  %1171 = vmatpush.msrb.mxu0 %v1081_v17  ;;  %v1110_v19 = vld [vmem:[#allocation13 + $0x78] sm:$0xff]  ;;  %v1109_v20 = vld [vmem:[#allocation13 + $0x70] sm:$0xff] }
 0xc6e   :  { %1142 = vmatpush.msrb.mxu3 %v1110_v19  ;;  %1122 = vmatpush.msrb.mxu2 %v1109_v20 }
 0xc6f   :  { %943 = vrot.lane.b32.xlu0 %v922_v21, %s2436_s3  ;;  %v2097_v22 = vmul.f32 -1.442695, %v922_v21  ;;  %1172 = vmatpush.msrb.mxu0 %v1079_v18  ;;  %v1108_v21 = vld [vmem:[#allocation13 + $0x68] sm:$0xff] }
 0xc70   :  { %1143 = vmatpush.msrb.mxu3 %v1108_v21 }
 0xc71   :  { %2191 = vpow2.f32 %v2097_v22  ;;  %v1107_v22 = vld [vmem:[#allocation13 + $0x60] sm:$0xff] }
 0xc72   :  { %1123 = vmatpush.msrb.mxu2 %v1107_v22 }
 0xc77   :  { %v2192_v23 = vpop.eup %2191 }
 0xc78   :  { %v926_v24 = vadd.f32 1.0, %v2192_v23  ;;  %v1106_v23 = vld [vmem:[#allocation13 + $0x58] sm:$0xff] }
 0xc79   :  { %1144 = vmatpush.msrb.mxu3 %v1106_v23 }
 0xc7a   :  { %2193 = vrcp.f32 %v926_v24  ;;  %v938_v32 = vand.u32 2147483648, %v926_v24  ;;  %vm932_vm5 = vweird.f32 %v926_v24  ;;  %v936_v33 = vand.u32 2147483647, %v926_v24 }
 0xc7c   :  { %v939_v38 = vor.u32 1.1754944e-38, %v938_v32  ;;  %vm937_vm7 = vcmp.eq.f32.partialorder %v936_v33, 8.507059e+37  ;;  %v1101_v32 = vld [vmem:[#allocation13 + $0x30] sm:$0xff]  ;;  %v1100_v33 = vld [vmem:[#allocation13 + $0x28] sm:$0xff] }
 0xc80   :  { %v2194_v25 = vpop.eup %2193 }
 0xc81   :  { %v928_v26 = vmul.f32 %v2194_v25, %v926_v24  ;;  %vm933_vm4 = vweird.f32 %v2194_v25  ;;  %v1105_v24 = vld [vmem:[#allocation13 + $0x50] sm:$0xff] }
 0xc82   :  { %vm934_vm6 = vmor %vm932_vm5, %vm933_vm4  ;;  %1124 = vmatpush.msrb.mxu2 %v1105_v24 }
 0xc83   :  { %v929_v27 = vsub.f32 1.0, %v928_v26 }
 0xc85   :  { %v930_v28 = vmul.f32 %v2194_v25, %v929_v27  ;;  %v1104_v27 = vld [vmem:[#allocation13 + $0x48] sm:$0xff] }
 0xc86   :  { %1145 = vmatpush.msrb.mxu3 %v1104_v27 }
 0xc87   :  { %v931_v31 = vadd.f32 %v2194_v25, %v930_v28  ;;  %v1103_v28 = vld [vmem:[#allocation13 + $0x40] sm:$0xff] }
 0xc88   :  { %1125 = vmatpush.msrb.mxu2 %v1103_v28 }
 0xc89   :  { %v935_v34 = vsel %vm934_vm6, %v2194_v25, %v931_v31  ;;  %v1102_v31 = vld [vmem:[#allocation13 + $0x38] sm:$0xff] }
 0xc8a   :  { %v940_v41 = vsel %vm937_vm7, %v939_v38, %v935_v34  ;;  %v1099_v34 = vld [vmem:[#allocation13 + $0x20] sm:$0xff]  ;;  %1146 = vmatpush.msrb.mxu3 %v1102_v31  ;;  %1126 = vmatpush.msrb.mxu2 %v1101_v32  ;;  %v1098_v38 = vld [vmem:[#allocation13 + $0x18] sm:$0xff] }
 0xc8b   :  { %v948_v47 = vmul.f32 %v940_v41, %v861_v11  ;;  %v957_v59 = vrot.slane %v940_v41, 1 }
 0xc8c   :  { %1147 = vmatpush.msrb.mxu3 %v1100_v33  ;;  %1127 = vmatpush.msrb.mxu2 %v1099_v34 }
 0xc8e   :  { %1148 = vmatpush.msrb.mxu3 %v1098_v38 }
 0xce1   :  { %v944_v29 = vpop.permute.xlu0 %943 }
 0xce2   :  { %v945_v30 = vrot.slane %v944_v29, 1 }
 0xce4   :  { %2195 = vtanh.f32 %v945_v30  ;;  %v2818_v30 = vld [vmem:[#allocation14 + $0x70] sm:$0xff] }
 0xcea   :  { %v2196_v39 = vpop.eup %2195 }
 0xceb   :  { %v949_v44 = vmul.f32 %v2196_v39, %v940_v41  ;;  %v1097_v39 = vld [vmem:[#allocation13 + $0x10] sm:$0xff]  ;;  %v1096_v41 = vld [vmem:[#allocation13 + $0x8] sm:$0xff] }
 0xcec   :  { %1128 = vmatpush.msrb.mxu2 %v1097_v39  ;;  %1149 = vmatpush.msrb.mxu3 %v1096_v41 }
 0xced   :  { %951 = vrot.lane.b32.xlu1 %v949_v44, %s2436_s3 }
 0xd5f   :  { %v952_v56 = vpop.permute.xlu1 %951 }
 0xd60   :  { %v954_v57 = vadd.f32 %v952_v56, %v948_v47  ;;  %v1094_v47 = vld [vmem:[#allocation11 + $0x78] sm:$0xff] }
 0xd61   :  { %v2822_v56 = vld [vmem:[#allocation14 + $0x78] sm:$0xff] }
 0xd62   :  { %2197 = vtanh.f32 %v954_v57 }
 0xd68   :  { %v2198_v58 = vpop.eup %2197 }
 0xd69   :  { %960 = vrot.lane.b32.xlu2 %v2198_v58, %s2436_s3  ;;  %v1092_v58 = vld [vmem:[#allocation11 + $0x68] sm:$0xff] }
 0xdc3   :  { %v961_v60 = vpop.permute.xlu2 %960 }
 0xdc4   :  { %v963_v61 = vmul.f32 %v961_v60, %v957_v59  ;;  %v2828_v59 = vld [vmem:[#allocation14 + $0x68] sm:$0xff]  ;;  %v1090_v60 = vld [vmem:[#allocation11 + $0x58] sm:$0xff] }
 0xdc6   :  { %964 = vst.msk [vmem:[#allocation3 + $0x6] sm:$0x1] %vm405_vm8, %v963_v61  ;;  %2098 = vmatmul.msk.f32.vlgmr.msra.gmra.mxu3 %vm200_vm2, %v963_v61  ;;  %2099 = vmatmul.msk.f32.vlgmr.msra.gmra.mxu0 %vm200_vm2, %v963_v61  ;;  %v1088_v61 = vld [vmem:[#allocation11 + $0x48] sm:$0xff] }
 0xdc7   :  { %1324 = vmatpush.msra.mxu0 %v2818_v30  ;;  %1252 = vmatpush.msra.mxu3 %v2822_v56 }
 0xdc9   :  { %1253 = vmatpush.msra.mxu3 %v2828_v59 }
 0xe43   :  { %v1007_v62 = vpop.f32.mrf.mxu0 }
 0xe44   :  { %v1012_v63 = vrot.slane %v1007_v62, 7  ;;  %v1086_v62 = vld [vmem:[#allocation11 + $0x38] sm:$0xff] }
 0xe49   :  { %v987_v0 = vpop.f32.mrf.mxu3 }
 0xe4a   :  { %v1013_v35 = vsel %vm360_vm3, %v987_v0, %v1012_v63  ;;  %v1084_v63 = vld [vmem:[#allocation11 + $0x28] sm:$0xff]  ;;  %v1082_v0 = vld [vmem:[#allocation11 + $0x18] sm:$0xff] }
 0xe4b   :  { %v1015_v36 = vadd.f32 %v1013_v35, %v966_v1  ;;  %v1080_v1 = vld [vmem:[#allocation11 + $0x8] sm:$0xff]  ;;  %v2835_v35 = vld [vmem:[#allocation14 + $0x60] sm:$0xff] }
 0xe4c   :  { %1325 = vmatpush.msra.mxu0 %v2835_v35 }
 0xe4d   :  { %1036 = vrot.lane.b32.xlu0 %v1015_v36, %s2436_s3  ;;  %v2100_v37 = vmul.f32 -1.442695, %v1015_v36  ;;  %v2837_v36 = vld [vmem:[#allocation14 + $0x58] sm:$0xff] }
 0xe4e   :  { %1254 = vmatpush.msra.mxu3 %v2837_v36 }
 0xe4f   :  { %2199 = vpow2.f32 %v2100_v37  ;;  %v2841_v37 = vld [vmem:[#allocation14 + $0x50] sm:$0xff] }
 0xe50   :  { %1326 = vmatpush.msra.mxu0 %v2841_v37 }
 0xe55   :  { %v2200_v40 = vpop.eup %2199 }
 0xe56   :  { %v1019_v42 = vadd.f32 1.0, %v2200_v40  ;;  %v2843_v40 = vld [vmem:[#allocation14 + $0x48] sm:$0xff] }
 0xe57   :  { %1255 = vmatpush.msra.mxu3 %v2843_v40 }
 0xe58   :  { %2201 = vrcp.f32 %v1019_v42  ;;  %v1031_v53 = vand.u32 2147483648, %v1019_v42  ;;  %vm1025_vm10 = vweird.f32 %v1019_v42  ;;  %v1029_v54 = vand.u32 2147483647, %v1019_v42 }
 0xe5a   :  { %v1032_v55 = vor.u32 1.1754944e-38, %v1031_v53  ;;  %vm1030_vm12 = vcmp.eq.f32.partialorder %v1029_v54, 8.507059e+37  ;;  %v2877_v53 = vld [vmem:[#allocation14] sm:$0xff] }
 0xe5e   :  { %v2202_v45 = vpop.eup %2201 }
 0xe5f   :  { %v1021_v43 = vmul.f32 %v2202_v45, %v1019_v42  ;;  %vm1026_vm9 = vweird.f32 %v2202_v45  ;;  %v2845_v42 = vld [vmem:[#allocation14 + $0x40] sm:$0xff] }
 0xe60   :  { %vm1027_vm11 = vmor %vm1025_vm10, %vm1026_vm9  ;;  %1327 = vmatpush.msra.mxu0 %v2845_v42 }
 0xe61   :  { %v1022_v46 = vsub.f32 1.0, %v1021_v43  ;;  %v2853_v43 = vld [vmem:[#allocation14 + $0x30] sm:$0xff] }
 0xe62   :  { %1328 = vmatpush.msra.mxu0 %v2853_v43 }
 0xe63   :  { %v1023_v48 = vmul.f32 %v2202_v45, %v1022_v46  ;;  %v2855_v46 = vld [vmem:[#allocation14 + $0x28] sm:$0xff] }
 0xe65   :  { %v1024_v52 = vadd.f32 %v2202_v45, %v1023_v48  ;;  %v2861_v48 = vld [vmem:[#allocation14 + $0x20] sm:$0xff] }
 0xe66   :  { %1329 = vmatpush.msra.mxu0 %v2861_v48 }
 0xe67   :  { %v1028_v51 = vsel %vm1027_vm11, %v2202_v45, %v1024_v52  ;;  %v2851_v45 = vld [vmem:[#allocation14 + $0x38] sm:$0xff]  ;;  %v2871_v52 = vld [vmem:[#allocation14 + $0x8] sm:$0xff] }
 0xe68   :  { %v1033_v3 = vsel %vm1030_vm12, %v1032_v55, %v1028_v51  ;;  %1256 = vmatpush.msra.mxu3 %v2851_v45 }
 0xe69   :  { %v1041_v10 = vmul.f32 %v1033_v3, %v954_v57  ;;  %v1050_v25 = vrot.slane %v1033_v3, 1  ;;  %v1095_v57 = vld [vmem:[#allocation13] sm:$0xff] }
 0xe6a   :  { %1129 = vmatpush.msrb.mxu2 %v1095_v57  ;;  %1257 = vmatpush.msra.mxu3 %v2855_v46 }
 0xe6c   :  { %1232 = vmatpush.msra.mxu2 %v2818_v30 }
 0xe6e   :  { %1233 = vmatpush.msra.mxu2 %v2835_v35 }
 0xe70   :  { %1234 = vmatpush.msra.mxu2 %v2841_v37 }
 0xe72   :  { %1235 = vmatpush.msra.mxu2 %v2845_v42 }
 0xe74   :  { %1236 = vmatpush.msra.mxu2 %v2853_v43 }
 0xe76   :  { %1237 = vmatpush.msra.mxu2 %v2861_v48 }
 0xebf   :  { %v1037_v50 = vpop.permute.xlu0 %1036 }
 0xec0   :  { %v1038_v49 = vrot.slane %v1037_v50, 1  ;;  %v2863_v50 = vld [vmem:[#allocation14 + $0x18] sm:$0xff] }
 0xec1   :  { %1258 = vmatpush.msra.mxu3 %v2863_v50 }
 0xec2   :  { %2203 = vtanh.f32 %v1038_v49  ;;  %v2869_v49 = vld [vmem:[#allocation14 + $0x10] sm:$0xff] }
 0xec3   :  { %1238 = vmatpush.msra.mxu2 %v2869_v49  ;;  %1259 = vmatpush.msra.mxu3 %v2871_v52 }
 0xec4   :  { %1330 = vmatpush.msra.mxu0 %v2869_v49 }
 0xec5   :  { %1239 = vmatpush.msra.mxu2 %v2877_v53 }
 0xec6   :  { %1331 = vmatpush.msra.mxu0 %v2877_v53 }
 0xec8   :  { %v2204_v2 = vpop.eup %2203 }
 0xec9   :  { %v1042_v4 = vmul.f32 %v2204_v2, %v1033_v3 }
 0xecb   :  { %1044 = vrot.lane.b32.xlu1 %v1042_v4, %s2436_s3 }
 0xf3d   :  { %v1045_v11 = vpop.permute.xlu1 %1044 }
 0xf3e   :  { %v1047_v12 = vadd.f32 %v1045_v11, %v1041_v10 }
 0xf40   :  { %2205 = vtanh.f32 %v1047_v12 }
 0xf46   :  { %v2206_v13 = vpop.eup %2205 }
 0xf47   :  { %1053 = vrot.lane.b32.xlu2 %v2206_v13, %s2436_s3 }
 0xfa1   :  { %v1054_v26 = vpop.permute.xlu2 %1053 }
 0xfa2   :  { %v1056_v29 = vmul.f32 %v1054_v26, %v1050_v25 }
 0xfa4   :  { %1057 = vst.msk [vmem:[#allocation3 + $0x7] sm:$0x1] %vm405_vm8, %v1056_v29 }
 0xfab   :  { %v1058_v44 = vld [vmem:[#allocation3] sm:$0xff] }
 0xfac   :  { %1074 = vmatpush.msra.mxu1 %v1058_v44  ;;  %2104 = vmatmul.msk.f32.vlgmr.msrb.gmra.mxu0 %vm200_vm2, %v1058_v44 }
 0xfad   :  { %2101 = vmatmul.msk.f32.vlgmr.msra.gmra.mxu1 %vm144_vm1, %v2541_v7  ;;  %1508 = vmatpush.msrb.mxu0 %v2818_v30 }
 0xfae   :  { %1185 = vmatpush.msrb.mxu1 %v1094_v47 }
 0xfaf   :  { %1509 = vmatpush.msrb.mxu0 %v2835_v35 }
 0xfb0   :  { %1186 = vmatpush.msrb.mxu1 %v1092_v58 }
 0xfb1   :  { %1510 = vmatpush.msrb.mxu0 %v2841_v37 }
 0xfb2   :  { %1187 = vmatpush.msrb.mxu1 %v1090_v60 }
 0xfb3   :  { %1511 = vmatpush.msrb.mxu0 %v2845_v42 }
 0xfb4   :  { %1188 = vmatpush.msrb.mxu1 %v1088_v61 }
 0xfb5   :  { %1512 = vmatpush.msrb.mxu0 %v2853_v43 }
 0xfb6   :  { %1189 = vmatpush.msrb.mxu1 %v1086_v62 }
 0xfb7   :  { %1513 = vmatpush.msrb.mxu0 %v2861_v48 }
 0xfb8   :  { %1190 = vmatpush.msrb.mxu1 %v1084_v63 }
 0xfb9   :  { %1514 = vmatpush.msrb.mxu0 %v2869_v49 }
 0xfba   :  { %1191 = vmatpush.msrb.mxu1 %v1082_v0 }
 0xfbb   :  { %1515 = vmatpush.msrb.mxu0 %v2877_v53 }
 0xfbc   :  { %1192 = vmatpush.msrb.mxu1 %v1080_v1 }
 0xfbd   :  { %2105 = vmatmul.msk.f32.vlgmr.msrb.gmra.mxu1 %vm200_vm2, %v1058_v44 }
 0xfbe   :  { %1344 = vmatpush.msra.mxu1 %v2822_v56 }
 0xfc0   :  { %1345 = vmatpush.msra.mxu1 %v2828_v59 }
 0xfc2   :  { %1346 = vmatpush.msra.mxu1 %v2837_v36 }
 0xfc4   :  { %1347 = vmatpush.msra.mxu1 %v2843_v40 }
 0xfc6   :  { %1348 = vmatpush.msra.mxu1 %v2851_v45 }
 0xfc8   :  { %1349 = vmatpush.msra.mxu1 %v2855_v46 }
 0xfca   :  { %1350 = vmatpush.msra.mxu1 %v2863_v50 }
 0xfcc   :  { %1351 = vmatpush.msra.mxu1 %v2871_v52 }
 0xfce   :  { %1528 = vmatpush.msrb.mxu1 %v2822_v56 }
 0xfd0   :  { %1529 = vmatpush.msrb.mxu1 %v2828_v59 }
 0xfd2   :  { %1530 = vmatpush.msrb.mxu1 %v2837_v36 }
 0xfd4   :  { %1531 = vmatpush.msrb.mxu1 %v2843_v40 }
 0xfd6   :  { %1532 = vmatpush.msrb.mxu1 %v2851_v45 }
 0xfd8   :  { %1533 = vmatpush.msrb.mxu1 %v2855_v46 }
 0xfda   :  { %1534 = vmatpush.msrb.mxu1 %v2863_v50 }
 0xfdc   :  { %1535 = vmatpush.msrb.mxu1 %v2871_v52 }
0x1029   :  { %v1174_v51 = vpop.f32.mrf.mxu0 }
0x102a   :  { %v1076_v54 = vpop.f32.mrf.mxu1 }
0x102b   :  { %2102 = vmatmul.msk.f32.vlgmr.msrb.gmra.mxu2 %vm200_vm2, %v1076_v54  ;;  %2103 = vmatmul.msk.f32.vlgmr.msrb.gmra.mxu3 %vm200_vm2, %v1076_v54 }
0x102c   :  { %1416 = vmatpush.msrb.mxu2 %v2818_v30  ;;  %1436 = vmatpush.msrb.mxu3 %v2822_v56 }
0x102e   :  { %1417 = vmatpush.msrb.mxu2 %v2835_v35  ;;  %1437 = vmatpush.msrb.mxu3 %v2828_v59 }
0x1030   :  { %1418 = vmatpush.msrb.mxu2 %v2841_v37  ;;  %1438 = vmatpush.msrb.mxu3 %v2837_v36 }
0x1032   :  { %1419 = vmatpush.msrb.mxu2 %v2845_v42  ;;  %1439 = vmatpush.msrb.mxu3 %v2843_v40 }
0x1033   :  { %1260 = vmatmul.f32.vlgmr.msra.gmra.mxu3 %v2435_v6  ;;  %1240 = vmatmul.f32.vlgmr.msra.gmra.mxu2 %v2435_v6  ;;  %v1197_v6 = vld [vmem:[%s3106_s7] sm:$0x3] }
0x1034   :  { %1420 = vmatpush.msrb.mxu2 %v2853_v43  ;;  %1440 = vmatpush.msrb.mxu3 %v2851_v45  ;;  %v1199_v2 = vperm.slane %v1197_v6, 0  ;;  %v1200_v3 = vperm.slane %v1197_v6, 1 }
0x1036   :  { %1421 = vmatpush.msrb.mxu2 %v2861_v48  ;;  %1441 = vmatpush.msrb.mxu3 %v2855_v46 }
0x1038   :  { %1422 = vmatpush.msrb.mxu2 %v2869_v49  ;;  %1442 = vmatpush.msrb.mxu3 %v2863_v50 }
0x103a   :  { %1423 = vmatpush.msrb.mxu2 %v2877_v53  ;;  %1443 = vmatpush.msrb.mxu3 %v2871_v52  ;;  %v1194_v55 = vpop.f32.mrf.mxu1 }
0x103c   :  { %1600 = vmatpush.msra.mxu2 %v2818_v30  ;;  %1620 = vmatpush.msra.mxu3 %v2822_v56 }
0x103e   :  { %1601 = vmatpush.msra.mxu2 %v2835_v35  ;;  %1621 = vmatpush.msra.mxu3 %v2828_v59 }
0x1040   :  { %1602 = vmatpush.msra.mxu2 %v2841_v37  ;;  %1622 = vmatpush.msra.mxu3 %v2837_v36 }
0x1042   :  { %1603 = vmatpush.msra.mxu2 %v2845_v42  ;;  %1623 = vmatpush.msra.mxu3 %v2843_v40 }
0x1044   :  { %1604 = vmatpush.msra.mxu2 %v2853_v43  ;;  %1624 = vmatpush.msra.mxu3 %v2851_v45 }
0x1046   :  { %1605 = vmatpush.msra.mxu2 %v2861_v48  ;;  %1625 = vmatpush.msra.mxu3 %v2855_v46 }
0x1048   :  { %1606 = vmatpush.msra.mxu2 %v2869_v49  ;;  %1626 = vmatpush.msra.mxu3 %v2863_v50 }
0x104a   :  { %1607 = vmatpush.msra.mxu2 %v2877_v53  ;;  %1627 = vmatpush.msra.mxu3 %v2871_v52 }
0x10ae   :  { %v1131_v4 = vpop.f32.mrf.mxu2  ;;  %v1151_v5 = vpop.f32.mrf.mxu3 }
0x10af   :  { %v1175_v8 = vadd.f32 %v1174_v51, %v1131_v4  ;;  %v1195_v9 = vadd.f32 %v1194_v55, %v1151_v5 }
0x10b1   :  { %v1203_v10 = vadd.f32 %v1199_v2, %v1175_v8  ;;  %v1204_v11 = vadd.f32 %v1200_v3, %v1195_v9 }
0x10b3   :  { %1205 = vst [vmem:[#allocation2] sm:$0xff] %v1203_v10 }
0x10b4   :  { %1206 = vst [vmem:[#allocation2 + $0x8] sm:$0xff] %v1204_v11 }
0x10b6   :  { %v1261_v12 = vpop.f32.mrf.mxu3  ;;  %v1241_v13 = vpop.f32.mrf.mxu2 }
0x10b7   :  { %v1266_v14 = vrot.slane %v1261_v12, 7 }
0x10b9   :  { %v1267_v15 = vsel %vm360_vm3, %v1241_v13, %v1266_v14 }
0x10bb   :  { %v1223_v16 = vld [vmem:[#allocation2] ss:$8 sm:$0x3]  ;;  %v1312_v0 = vld [vmem:[#allocation2 + $0x1] ss:$8 sm:$0x3] }
0x10bc   :  { %v1269_v17 = vadd.f32 %v1267_v15, %v1223_v16 }
0x10be   :  { %1290 = vrot.lane.b32.xlu0 %v1269_v17, %s2436_s3  ;;  %v2106_v18 = vmul.f32 -1.442695, %v1269_v17 }
0x10c0   :  { %2207 = vpow2.f32 %v2106_v18 }
0x10c6   :  { %v2208_v19 = vpop.eup %2207 }
0x10c7   :  { %v1273_v20 = vadd.f32 1.0, %v2208_v19 }
0x10c9   :  { %2209 = vrcp.f32 %v1273_v20  ;;  %v1285_v28 = vand.u32 2147483648, %v1273_v20  ;;  %vm1279_vm14 = vweird.f32 %v1273_v20  ;;  %v1283_v29 = vand.u32 2147483647, %v1273_v20 }
0x10cb   :  { %v1286_v32 = vor.u32 1.1754944e-38, %v1285_v28  ;;  %vm1284_vm0 = vcmp.eq.f32.partialorder %v1283_v29, 8.507059e+37  ;;  %v1404_v28 = vld [vmem:[#allocation2 + $0x2] ss:$8 sm:$0x3] }
0x10cf   :  { %v2210_v21 = vpop.eup %2209 }
0x10d0   :  { %v1275_v22 = vmul.f32 %v2210_v21, %v1273_v20  ;;  %vm1280_vm13 = vweird.f32 %v2210_v21 }
0x10d1   :  { %vm1281_vm15 = vmor %vm1279_vm14, %vm1280_vm13 }
0x10d2   :  { %v1276_v23 = vsub.f32 1.0, %v1275_v22 }
0x10d4   :  { %v1277_v24 = vmul.f32 %v2210_v21, %v1276_v23 }
0x10d6   :  { %v1278_v27 = vadd.f32 %v2210_v21, %v1277_v24 }
0x10d8   :  { %v1282_v31 = vsel %vm1281_vm15, %v2210_v21, %v1278_v27 }
0x10d9   :  { %v1287_v34 = vsel %vm1284_vm0, %v1286_v32, %v1282_v31 }
0x10da   :  { %v1295_v39 = vmul.f32 0.0, %v1287_v34  ;;  %v1304_v57 = vrot.slane %v1287_v34, 1 }
0x1130   :  { %v1291_v25 = vpop.permute.xlu0 %1290 }
0x1131   :  { %v1292_v26 = vrot.slane %v1291_v25, 1 }
0x1133   :  { %2211 = vtanh.f32 %v1292_v26 }
0x1139   :  { %v2212_v33 = vpop.eup %2211 }
0x113a   :  { %v1296_v38 = vmul.f32 %v2212_v33, %v1287_v34 }
0x113c   :  { %1298 = vrot.lane.b32.xlu1 %v1296_v38, %s2436_s3 }
0x11ae   :  { %v1299_v41 = vpop.permute.xlu1 %1298 }
0x11af   :  { %v1301_v44 = vadd.f32 %v1299_v41, %v1295_v39 }
0x11b1   :  { %2213 = vtanh.f32 %v1301_v44 }
0x11b7   :  { %v2214_v47 = vpop.eup %2213 }
0x11b8   :  { %1307 = vrot.lane.b32.xlu2 %v2214_v47, %s2436_s3 }
0x1212   :  { %v1308_v58 = vpop.permute.xlu2 %1307 }
0x1213   :  { %v1310_v60 = vmul.f32 %v1308_v58, %v1304_v57 }
0x1215   :  { %1311 = vst.msk [vmem:[#allocation4] sm:$0x1] %vm405_vm8, %v1310_v60  ;;  %2107 = vmatmul.msk.f32.vlgmr.msra.gmra.mxu0 %vm200_vm2, %v1310_v60  ;;  %2108 = vmatmul.msk.f32.vlgmr.msra.gmra.mxu1 %vm200_vm2, %v1310_v60 }
0x1216   :  { %1692 = vmatpush.msra.mxu0 %v2818_v30  ;;  %1712 = vmatpush.msra.mxu1 %v2822_v56 }
0x1218   :  { %1693 = vmatpush.msra.mxu0 %v2835_v35  ;;  %1713 = vmatpush.msra.mxu1 %v2828_v59 }
0x121a   :  { %1694 = vmatpush.msra.mxu0 %v2841_v37  ;;  %1714 = vmatpush.msra.mxu1 %v2837_v36 }
0x121c   :  { %1695 = vmatpush.msra.mxu0 %v2845_v42  ;;  %1715 = vmatpush.msra.mxu1 %v2843_v40 }
0x121e   :  { %1696 = vmatpush.msra.mxu0 %v2853_v43  ;;  %1716 = vmatpush.msra.mxu1 %v2851_v45 }
0x1220   :  { %1697 = vmatpush.msra.mxu0 %v2861_v48  ;;  %1717 = vmatpush.msra.mxu1 %v2855_v46 }
0x1222   :  { %1698 = vmatpush.msra.mxu0 %v2869_v49  ;;  %1718 = vmatpush.msra.mxu1 %v2863_v50 }
0x1224   :  { %1699 = vmatpush.msra.mxu0 %v2877_v53  ;;  %1719 = vmatpush.msra.mxu1 %v2871_v52 }
0x1292   :  { %v1353_v61 = vpop.f32.mrf.mxu1  ;;  %v1333_v63 = vpop.f32.mrf.mxu0 }
0x1293   :  { %v1358_v62 = vrot.slane %v1353_v61, 7 }
0x1295   :  { %v1359_v1 = vsel %vm360_vm3, %v1333_v63, %v1358_v62 }
0x1296   :  { %v1361_v54 = vadd.f32 %v1359_v1, %v1312_v0 }
0x1298   :  { %1382 = vrot.lane.b32.xlu0 %v1361_v54, %s2436_s3  ;;  %v2109_v6 = vmul.f32 -1.442695, %v1361_v54 }
0x129a   :  { %2215 = vpow2.f32 %v2109_v6 }
0x12a0   :  { %v2216_v51 = vpop.eup %2215 }
0x12a1   :  { %v1365_v55 = vadd.f32 1.0, %v2216_v51 }
0x12a3   :  { %2217 = vrcp.f32 %v1365_v55  ;;  %v1377_v11 = vand.u32 2147483648, %v1365_v55  ;;  %vm1371_vm5 = vweird.f32 %v1365_v55  ;;  %v1375_v12 = vand.u32 2147483647, %v1365_v55 }
0x12a5   :  { %v1378_v14 = vor.u32 1.1754944e-38, %v1377_v11  ;;  %vm1376_vm7 = vcmp.eq.f32.partialorder %v1375_v12, 8.507059e+37 }
0x12a9   :  { %v2218_v2 = vpop.eup %2217 }
0x12aa   :  { %v1367_v3 = vmul.f32 %v2218_v2, %v1365_v55  ;;  %vm1372_vm4 = vweird.f32 %v2218_v2 }
0x12ab   :  { %vm1373_vm6 = vmor %vm1371_vm5, %vm1372_vm4 }
0x12ac   :  { %v1368_v4 = vsub.f32 1.0, %v1367_v3 }
0x12ae   :  { %v1369_v5 = vmul.f32 %v2218_v2, %v1368_v4 }
0x12b0   :  { %v1370_v10 = vadd.f32 %v2218_v2, %v1369_v5 }
0x12b2   :  { %v1374_v13 = vsel %vm1373_vm6, %v2218_v2, %v1370_v10 }
0x12b3   :  { %v1379_v16 = vsel %vm1376_vm7, %v1378_v14, %v1374_v13 }
0x12b4   :  { %v1387_v18 = vmul.f32 %v1379_v16, %v1301_v44  ;;  %v1396_v22 = vrot.slane %v1379_v16, 1 }
0x130a   :  { %v1383_v8 = vpop.permute.xlu0 %1382 }
0x130b   :  { %v1384_v9 = vrot.slane %v1383_v8, 1 }
0x130d   :  { %2219 = vtanh.f32 %v1384_v9 }
0x1313   :  { %v2220_v15 = vpop.eup %2219 }
0x1314   :  { %v1388_v17 = vmul.f32 %v2220_v15, %v1379_v16 }
0x1316   :  { %1390 = vrot.lane.b32.xlu1 %v1388_v17, %s2436_s3 }
0x1388   :  { %v1391_v19 = vpop.permute.xlu1 %1390 }
0x1389   :  { %v1393_v20 = vadd.f32 %v1391_v19, %v1387_v18 }
0x138b   :  { %2221 = vtanh.f32 %v1393_v20 }
0x1391   :  { %v2222_v21 = vpop.eup %2221 }
0x1392   :  { %1399 = vrot.lane.b32.xlu2 %v2222_v21, %s2436_s3 }
0x13ec   :  { %v1400_v23 = vpop.permute.xlu2 %1399 }
0x13ed   :  { %v1402_v24 = vmul.f32 %v1400_v23, %v1396_v22 }
0x13ef   :  { %1403 = vst.msk [vmem:[#allocation4 + $0x1] sm:$0x1] %vm405_vm8, %v1402_v24  ;;  %2110 = vmatmul.msk.f32.vlgmr.msrb.gmra.mxu2 %vm200_vm2, %v1402_v24  ;;  %2111 = vmatmul.msk.f32.vlgmr.msrb.gmra.mxu3 %vm200_vm2, %v1402_v24 }
0x13f0   :  { %1784 = vmatpush.msrb.mxu2 %v2818_v30  ;;  %1804 = vmatpush.msrb.mxu3 %v2822_v56 }
0x13f2   :  { %1785 = vmatpush.msrb.mxu2 %v2835_v35  ;;  %1805 = vmatpush.msrb.mxu3 %v2828_v59 }
0x13f4   :  { %1786 = vmatpush.msrb.mxu2 %v2841_v37  ;;  %1806 = vmatpush.msrb.mxu3 %v2837_v36 }
0x13f6   :  { %1787 = vmatpush.msrb.mxu2 %v2845_v42  ;;  %1807 = vmatpush.msrb.mxu3 %v2843_v40 }
0x13f8   :  { %1788 = vmatpush.msrb.mxu2 %v2853_v43  ;;  %1808 = vmatpush.msrb.mxu3 %v2851_v45 }
0x13fa   :  { %1789 = vmatpush.msrb.mxu2 %v2861_v48  ;;  %1809 = vmatpush.msrb.mxu3 %v2855_v46 }
0x13fc   :  { %1790 = vmatpush.msrb.mxu2 %v2869_v49  ;;  %1810 = vmatpush.msrb.mxu3 %v2863_v50 }
0x13fe   :  { %1791 = vmatpush.msrb.mxu2 %v2877_v53  ;;  %1811 = vmatpush.msrb.mxu3 %v2871_v52 }
0x1472   :  { %v1445_v25 = vpop.f32.mrf.mxu3  ;;  %v1425_v27 = vpop.f32.mrf.mxu2 }
0x1473   :  { %v1450_v26 = vrot.slane %v1445_v25, 7  ;;  %v1588_v25 = vld [vmem:[#allocation2 + $0x4] ss:$8 sm:$0x3] }
0x1475   :  { %v1451_v29 = vsel %vm360_vm3, %v1425_v27, %v1450_v26 }
0x1476   :  { %v1453_v31 = vadd.f32 %v1451_v29, %v1404_v28 }
0x1478   :  { %1474 = vrot.lane.b32.xlu0 %v1453_v31, %s2436_s3  ;;  %v2112_v32 = vmul.f32 -1.442695, %v1453_v31 }
0x147a   :  { %2223 = vpow2.f32 %v2112_v32 }
0x1480   :  { %v2224_v33 = vpop.eup %2223 }
0x1481   :  { %v1457_v34 = vadd.f32 1.0, %v2224_v33 }
0x1483   :  { %2225 = vrcp.f32 %v1457_v34  ;;  %v1469_v60 = vand.u32 2147483648, %v1457_v34  ;;  %vm1463_vm10 = vweird.f32 %v1457_v34  ;;  %v1467_v61 = vand.u32 2147483647, %v1457_v34 }
0x1485   :  { %v1470_v63 = vor.u32 1.1754944e-38, %v1469_v60  ;;  %vm1468_vm12 = vcmp.eq.f32.partialorder %v1467_v61, 8.507059e+37 }
0x1489   :  { %v2226_v38 = vpop.eup %2225 }
0x148a   :  { %v1459_v39 = vmul.f32 %v2226_v38, %v1457_v34  ;;  %vm1464_vm9 = vweird.f32 %v2226_v38 }
0x148b   :  { %vm1465_vm11 = vmor %vm1463_vm10, %vm1464_vm9 }
0x148c   :  { %v1460_v41 = vsub.f32 1.0, %v1459_v39 }
0x148e   :  { %v1461_v44 = vmul.f32 %v2226_v38, %v1460_v41 }
0x1490   :  { %v1462_v58 = vadd.f32 %v2226_v38, %v1461_v44 }
0x1492   :  { %v1466_v62 = vsel %vm1465_vm11, %v2226_v38, %v1462_v58 }
0x1493   :  { %v1471_v1 = vsel %vm1468_vm12, %v1470_v63, %v1466_v62 }
0x1494   :  { %v1479_v6 = vmul.f32 %v1471_v1, %v1393_v20  ;;  %v1488_v3 = vrot.slane %v1471_v1, 1 }
0x14ea   :  { %v1475_v47 = vpop.permute.xlu0 %1474 }
0x14eb   :  { %v1476_v57 = vrot.slane %v1475_v47, 1 }
0x14ed   :  { %2227 = vtanh.f32 %v1476_v57 }
0x14f3   :  { %v2228_v0 = vpop.eup %2227 }
0x14f4   :  { %v1480_v54 = vmul.f32 %v2228_v0, %v1471_v1 }
0x14f6   :  { %1482 = vrot.lane.b32.xlu1 %v1480_v54, %s2436_s3 }
0x1568   :  { %v1483_v51 = vpop.permute.xlu1 %1482 }
0x1569   :  { %v1485_v55 = vadd.f32 %v1483_v51, %v1479_v6 }
0x156b   :  { %2229 = vtanh.f32 %v1485_v55 }
0x1571   :  { %v2230_v2 = vpop.eup %2229 }
0x1572   :  { %1491 = vrot.lane.b32.xlu2 %v2230_v2, %s2436_s3 }
0x15cc   :  { %v1492_v4 = vpop.permute.xlu2 %1491 }
0x15cd   :  { %v1494_v5 = vmul.f32 %v1492_v4, %v1488_v3 }
0x15cf   :  { %1495 = vst.msk [vmem:[#allocation4 + $0x2] sm:$0x1] %vm405_vm8, %v1494_v5  ;;  %2113 = vmatmul.msk.f32.vlgmr.msrb.gmra.mxu0 %vm200_vm2, %v1494_v5  ;;  %2114 = vmatmul.msk.f32.vlgmr.msrb.gmra.mxu1 %vm200_vm2, %v1494_v5 }
0x15d0   :  { %1876 = vmatpush.msrb.mxu0 %v2818_v30  ;;  %1896 = vmatpush.msrb.mxu1 %v2822_v56 }
0x15d2   :  { %1877 = vmatpush.msrb.mxu0 %v2835_v35  ;;  %1897 = vmatpush.msrb.mxu1 %v2828_v59  ;;  %v1496_v35 = vld [vmem:[#allocation2 + $0x3] ss:$8 sm:$0x3] }
0x15d4   :  { %1878 = vmatpush.msrb.mxu0 %v2841_v37  ;;  %1898 = vmatpush.msrb.mxu1 %v2837_v36 }
0x15d6   :  { %1879 = vmatpush.msrb.mxu0 %v2845_v42  ;;  %1899 = vmatpush.msrb.mxu1 %v2843_v40 }
0x15d8   :  { %1880 = vmatpush.msrb.mxu0 %v2853_v43  ;;  %1900 = vmatpush.msrb.mxu1 %v2851_v45 }
0x15da   :  { %1881 = vmatpush.msrb.mxu0 %v2861_v48  ;;  %1901 = vmatpush.msrb.mxu1 %v2855_v46 }
0x15dc   :  { %1882 = vmatpush.msrb.mxu0 %v2869_v49  ;;  %1902 = vmatpush.msrb.mxu1 %v2863_v50 }
0x15de   :  { %1883 = vmatpush.msrb.mxu0 %v2877_v53  ;;  %1903 = vmatpush.msrb.mxu1 %v2871_v52 }
0x164c   :  { %v1537_v30 = vpop.f32.mrf.mxu1  ;;  %v1517_v59 = vpop.f32.mrf.mxu0 }
0x164d   :  { %v1542_v56 = vrot.slane %v1537_v30, 7  ;;  %v1680_v30 = vld [vmem:[#allocation2 + $0x5] ss:$8 sm:$0x3] }
0x164f   :  { %v1543_v36 = vsel %vm360_vm3, %v1517_v59, %v1542_v56 }
0x1650   :  { %v1545_v37 = vadd.f32 %v1543_v36, %v1496_v35 }
0x1652   :  { %1566 = vrot.lane.b32.xlu0 %v1545_v37, %s2436_s3  ;;  %v2115_v40 = vmul.f32 -1.442695, %v1545_v37 }
0x1654   :  { %2231 = vpow2.f32 %v2115_v40 }
0x165a   :  { %v2232_v42 = vpop.eup %2231 }
0x165b   :  { %v1549_v45 = vadd.f32 1.0, %v2232_v42 }
0x165d   :  { %2233 = vrcp.f32 %v1549_v45  ;;  %v1561_v8 = vand.u32 2147483648, %v1549_v45  ;;  %vm1555_vm14 = vweird.f32 %v1549_v45  ;;  %v1559_v9 = vand.u32 2147483647, %v1549_v45 }
0x165f   :  { %v1562_v11 = vor.u32 1.1754944e-38, %v1561_v8  ;;  %vm1560_vm0 = vcmp.eq.f32.partialorder %v1559_v9, 8.507059e+37 }
0x1663   :  { %v2234_v43 = vpop.eup %2233 }
0x1664   :  { %v1551_v46 = vmul.f32 %v2234_v43, %v1549_v45  ;;  %vm1556_vm13 = vweird.f32 %v2234_v43 }
0x1665   :  { %vm1557_vm15 = vmor %vm1555_vm14, %vm1556_vm13 }
0x1666   :  { %v1552_v48 = vsub.f32 1.0, %v1551_v46 }
0x1668   :  { %v1553_v50 = vmul.f32 %v2234_v43, %v1552_v48 }
0x166a   :  { %v1554_v53 = vadd.f32 %v2234_v43, %v1553_v50 }
0x166c   :  { %v1558_v10 = vsel %vm1557_vm15, %v2234_v43, %v1554_v53 }
0x166d   :  { %v1563_v13 = vsel %vm1560_vm0, %v1562_v11, %v1558_v10 }
0x166e   :  { %v1571_v15 = vmul.f32 %v1563_v13, %v1485_v55  ;;  %v1580_v19 = vrot.slane %v1563_v13, 1 }
0x16c4   :  { %v1567_v49 = vpop.permute.xlu0 %1566 }
0x16c5   :  { %v1568_v52 = vrot.slane %v1567_v49, 1 }
0x16c7   :  { %2235 = vtanh.f32 %v1568_v52 }
0x16cd   :  { %v2236_v12 = vpop.eup %2235 }
0x16ce   :  { %v1572_v14 = vmul.f32 %v2236_v12, %v1563_v13 }
0x16d0   :  { %1574 = vrot.lane.b32.xlu1 %v1572_v14, %s2436_s3 }
0x1742   :  { %v1575_v16 = vpop.permute.xlu1 %1574 }
0x1743   :  { %v1577_v17 = vadd.f32 %v1575_v16, %v1571_v15 }
0x1745   :  { %2237 = vtanh.f32 %v1577_v17 }
0x174b   :  { %v2238_v18 = vpop.eup %2237 }
0x174c   :  { %1583 = vrot.lane.b32.xlu2 %v2238_v18, %s2436_s3 }
0x17a6   :  { %v1584_v20 = vpop.permute.xlu2 %1583 }
0x17a7   :  { %v1586_v21 = vmul.f32 %v1584_v20, %v1580_v19 }
0x17a9   :  { %1587 = vst.msk [vmem:[#allocation4 + $0x3] sm:$0x1] %vm405_vm8, %v1586_v21  ;;  %2116 = vmatmul.msk.f32.vlgmr.msra.gmra.mxu2 %vm200_vm2, %v1586_v21  ;;  %2117 = vmatmul.msk.f32.vlgmr.msra.gmra.mxu3 %vm200_vm2, %v1586_v21 }
0x182c   :  { %v1629_v22 = vpop.f32.mrf.mxu3  ;;  %v1609_v24 = vpop.f32.mrf.mxu2 }
0x182d   :  { %v1634_v23 = vrot.slane %v1629_v22, 7  ;;  %v1772_v22 = vld [vmem:[#allocation2 + $0x6] ss:$8 sm:$0x3] }
0x182f   :  { %v1635_v26 = vsel %vm360_vm3, %v1609_v24, %v1634_v23 }
0x1830   :  { %v1637_v27 = vadd.f32 %v1635_v26, %v1588_v25 }
0x1832   :  { %1658 = vrot.lane.b32.xlu0 %v1637_v27, %s2436_s3  ;;  %v2118_v28 = vmul.f32 -1.442695, %v1637_v27 }
0x1834   :  { %2239 = vpow2.f32 %v2118_v28 }
0x183a   :  { %v2240_v29 = vpop.eup %2239 }
0x183b   :  { %v1641_v31 = vadd.f32 1.0, %v2240_v29 }
0x183d   :  { %2241 = vrcp.f32 %v1641_v31  ;;  %v1653_v47 = vand.u32 2147483648, %v1641_v31  ;;  %vm1647_vm5 = vweird.f32 %v1641_v31  ;;  %v1651_v57 = vand.u32 2147483647, %v1641_v31 }
0x183f   :  { %v1654_v60 = vor.u32 1.1754944e-38, %v1653_v47  ;;  %vm1652_vm7 = vcmp.eq.f32.partialorder %v1651_v57, 8.507059e+37 }
0x1843   :  { %v2242_v32 = vpop.eup %2241 }
0x1844   :  { %v1643_v33 = vmul.f32 %v2242_v32, %v1641_v31  ;;  %vm1648_vm4 = vweird.f32 %v2242_v32 }
0x1845   :  { %vm1649_vm6 = vmor %vm1647_vm5, %vm1648_vm4 }
0x1846   :  { %v1644_v34 = vsub.f32 1.0, %v1643_v33 }
0x1848   :  { %v1645_v38 = vmul.f32 %v2242_v32, %v1644_v34 }
0x184a   :  { %v1646_v44 = vadd.f32 %v2242_v32, %v1645_v38 }
0x184c   :  { %v1650_v58 = vsel %vm1649_vm6, %v2242_v32, %v1646_v44 }
0x184d   :  { %v1655_v62 = vsel %vm1652_vm7, %v1654_v60, %v1650_v58  ;;  %vm2063_vm7 = vcmask 7168  }
0x184e   :  { %v1663_v0 = vmul.f32 %v1655_v62, %v1577_v17  ;;  %v1672_v51 = vrot.slane %v1655_v62, 1 }
0x18a4   :  { %v1659_v39 = vpop.permute.xlu0 %1658 }
0x18a5   :  { %v1660_v41 = vrot.slane %v1659_v39, 1 }
0x18a7   :  { %2243 = vtanh.f32 %v1660_v41 }
0x18ad   :  { %v2244_v61 = vpop.eup %2243 }
0x18ae   :  { %v1664_v63 = vmul.f32 %v2244_v61, %v1655_v62 }
0x18b0   :  { %1666 = vrot.lane.b32.xlu1 %v1664_v63, %s2436_s3 }
0x1922   :  { %v1667_v1 = vpop.permute.xlu1 %1666 }
0x1923   :  { %v1669_v54 = vadd.f32 %v1667_v1, %v1663_v0 }
0x1925   :  { %2245 = vtanh.f32 %v1669_v54 }
0x192b   :  { %v2246_v6 = vpop.eup %2245 }
0x192c   :  { %1675 = vrot.lane.b32.xlu2 %v2246_v6, %s2436_s3 }
0x1986   :  { %v1676_v55 = vpop.permute.xlu2 %1675 }
0x1987   :  { %v1678_v2 = vmul.f32 %v1676_v55, %v1672_v51 }
0x1989   :  { %1679 = vst.msk [vmem:[#allocation4 + $0x4] sm:$0x1] %vm405_vm8, %v1678_v2  ;;  %2119 = vmatmul.msk.f32.vlgmr.msra.gmra.mxu0 %vm200_vm2, %v1678_v2  ;;  %2120 = vmatmul.msk.f32.vlgmr.msra.gmra.mxu1 %vm200_vm2, %v1678_v2 }
0x1a06   :  { %v1721_v3 = vpop.f32.mrf.mxu1  ;;  %v1701_v5 = vpop.f32.mrf.mxu0 }
0x1a07   :  { %v1726_v4 = vrot.slane %v1721_v3, 7 }
0x1a09   :  { %v1727_v56 = vsel %vm360_vm3, %v1701_v5, %v1726_v4  ;;  %v1864_v4 = vld [vmem:[#allocation2 + $0x7] ss:$8 sm:$0x3] }
0x1a0a   :  { %v1729_v59 = vadd.f32 %v1727_v56, %v1680_v30 }
0x1a0c   :  { %1750 = vrot.lane.b32.xlu0 %v1729_v59, %s2436_s3  ;;  %v2121_v35 = vmul.f32 -1.442695, %v1729_v59 }
0x1a0e   :  { %2247 = vpow2.f32 %v2121_v35 }
0x1a14   :  { %v2248_v36 = vpop.eup %2247 }
0x1a15   :  { %v1733_v37 = vadd.f32 1.0, %v2248_v36 }
0x1a17   :  { %2249 = vrcp.f32 %v1733_v37  ;;  %v1745_v49 = vand.u32 2147483648, %v1733_v37  ;;  %vm1739_vm10 = vweird.f32 %v1733_v37  ;;  %v1743_v52 = vand.u32 2147483647, %v1733_v37 }
0x1a19   :  { %v1746_v8 = vor.u32 1.1754944e-38, %v1745_v49  ;;  %vm1744_vm12 = vcmp.eq.f32.partialorder %v1743_v52, 8.507059e+37 }
0x1a1d   :  { %v2250_v40 = vpop.eup %2249 }
0x1a1e   :  { %v1735_v42 = vmul.f32 %v2250_v40, %v1733_v37  ;;  %vm1740_vm9 = vweird.f32 %v2250_v40 }
0x1a1f   :  { %vm1741_vm11 = vmor %vm1739_vm10, %vm1740_vm9 }
0x1a20   :  { %v1736_v45 = vsub.f32 1.0, %v1735_v42 }
0x1a22   :  { %v1737_v43 = vmul.f32 %v2250_v40, %v1736_v45 }
0x1a24   :  { %v1738_v50 = vadd.f32 %v2250_v40, %v1737_v43 }
0x1a26   :  { %v1742_v53 = vsel %vm1741_vm11, %v2250_v40, %v1738_v50 }
0x1a27   :  { %v1747_v10 = vsel %vm1744_vm12, %v1746_v8, %v1742_v53 }
0x1a28   :  { %v1755_v12 = vmul.f32 %v1747_v10, %v1669_v54  ;;  %v1764_v16 = vrot.slane %v1747_v10, 1 }
0x1a7e   :  { %v1751_v46 = vpop.permute.xlu0 %1750 }
0x1a7f   :  { %v1752_v48 = vrot.slane %v1751_v46, 1 }
0x1a81   :  { %2251 = vtanh.f32 %v1752_v48 }
0x1a87   :  { %v2252_v9 = vpop.eup %2251 }
0x1a88   :  { %v1756_v11 = vmul.f32 %v2252_v9, %v1747_v10  ;;  %v1984_v9 = vld [vmem:[%s3108_s9 + $0x38] sm:$0xff]  ;;  %v1983_v10 = vld [vmem:[%s3108_s9 + $0x30] sm:$0xff] }
0x1a89   :  { %2027 = vmatpush.msra.mxu0 %v1984_v9 }
0x1a8a   :  { %1758 = vrot.lane.b32.xlu1 %v1756_v11, %s2436_s3  ;;  %v1982_v11 = vld [vmem:[%s3108_s9 + $0x28] sm:$0xff] }
0x1a8b   :  { %2028 = vmatpush.msra.mxu0 %v1983_v10 }
0x1a8d   :  { %2029 = vmatpush.msra.mxu0 %v1982_v11 }
0x1afc   :  { %v1759_v13 = vpop.permute.xlu1 %1758 }
0x1afd   :  { %v1761_v14 = vadd.f32 %v1759_v13, %v1755_v12 }
0x1aff   :  { %2253 = vtanh.f32 %v1761_v14 }
0x1b05   :  { %v2254_v15 = vpop.eup %2253 }
0x1b06   :  { %1767 = vrot.lane.b32.xlu2 %v2254_v15, %s2436_s3 }
0x1b60   :  { %v1768_v17 = vpop.permute.xlu2 %1767 }
0x1b61   :  { %v1770_v18 = vmul.f32 %v1768_v17, %v1764_v16  ;;  %v1981_v16 = vld [vmem:[%s3108_s9 + $0x20] sm:$0xff]  ;;  %v1980_v17 = vld [vmem:[%s3108_s9 + $0x18] sm:$0xff] }
0x1b62   :  { %2030 = vmatpush.msra.mxu0 %v1981_v16 }
0x1b63   :  { %1771 = vst.msk [vmem:[#allocation4 + $0x5] sm:$0x1] %vm405_vm8, %v1770_v18  ;;  %2122 = vmatmul.msk.f32.vlgmr.msrb.gmra.mxu2 %vm200_vm2, %v1770_v18  ;;  %2123 = vmatmul.msk.f32.vlgmr.msrb.gmra.mxu3 %vm200_vm2, %v1770_v18  ;;  %v1979_v18 = vld [vmem:[%s3108_s9 + $0x10] sm:$0xff] }
0x1b64   :  { %2031 = vmatpush.msra.mxu0 %v1980_v17 }
0x1b66   :  { %2032 = vmatpush.msra.mxu0 %v1979_v18 }
0x1be6   :  { %v1813_v19 = vpop.f32.mrf.mxu3  ;;  %v1793_v21 = vpop.f32.mrf.mxu2 }
0x1be7   :  { %v1818_v20 = vrot.slane %v1813_v19, 7  ;;  %v1978_v19 = vld [vmem:[%s3108_s9 + $0x8] sm:$0xff] }
0x1be8   :  { %2033 = vmatpush.msra.mxu0 %v1978_v19 }
0x1be9   :  { %v1819_v23 = vsel %vm360_vm3, %v1793_v21, %v1818_v20  ;;  %v1977_v20 = vld [vmem:[%s3108_s9] sm:$0xff]  ;;  %v1992_v21 = vld [vmem:[%s3109_s10 + $0x38] sm:$0xff] }
0x1bea   :  { %v1821_v24 = vadd.f32 %v1819_v23, %v1772_v22  ;;  %2034 = vmatpush.msra.mxu0 %v1977_v20  ;;  %v1991_v22 = vld [vmem:[%s3109_s10 + $0x30] sm:$0xff]  ;;  %2004 = vmatpush.msra.mxu3 %v1992_v21  ;;  %v1990_v23 = vld [vmem:[%s3109_s10 + $0x28] sm:$0xff] }
0x1bec   :  { %1842 = vrot.lane.b32.xlu0 %v1821_v24, %s2436_s3  ;;  %v2124_v25 = vmul.f32 -1.442695, %v1821_v24  ;;  %2005 = vmatpush.msra.mxu3 %v1991_v22  ;;  %v1989_v24 = vld [vmem:[%s3109_s10 + $0x20] sm:$0xff] }
0x1bee   :  { %2255 = vpow2.f32 %v2124_v25  ;;  %2006 = vmatpush.msra.mxu3 %v1990_v23 }
0x1bf0   :  { %2007 = vmatpush.msra.mxu3 %v1989_v24 }
0x1bf4   :  { %v2256_v26 = vpop.eup %2255 }
0x1bf5   :  { %v1825_v27 = vadd.f32 1.0, %v2256_v26 }
0x1bf7   :  { %2257 = vrcp.f32 %v1825_v27  ;;  %v1837_v39 = vand.u32 2147483648, %v1825_v27  ;;  %vm1831_vm14 = vweird.f32 %v1825_v27  ;;  %v1835_v41 = vand.u32 2147483647, %v1825_v27 }
0x1bf9   :  { %v1838_v47 = vor.u32 1.1754944e-38, %v1837_v39  ;;  %vm1836_vm0 = vcmp.eq.f32.partialorder %v1835_v41, 8.507059e+37 }
0x1bfd   :  { %v2258_v28 = vpop.eup %2257 }
0x1bfe   :  { %v1827_v29 = vmul.f32 %v2258_v28, %v1825_v27  ;;  %vm1832_vm13 = vweird.f32 %v2258_v28 }
0x1bff   :  { %vm1833_vm15 = vmor %vm1831_vm14, %vm1832_vm13 }
0x1c00   :  { %v1828_v31 = vsub.f32 1.0, %v1827_v29  ;;  %v1988_v29 = vld [vmem:[%s3109_s10 + $0x18] sm:$0xff] }
0x1c01   :  { %2008 = vmatpush.msra.mxu3 %v1988_v29 }
0x1c02   :  { %v1829_v32 = vmul.f32 %v2258_v28, %v1828_v31  ;;  %v1987_v31 = vld [vmem:[%s3109_s10 + $0x10] sm:$0xff] }
0x1c03   :  { %2009 = vmatpush.msra.mxu3 %v1987_v31 }
0x1c04   :  { %v1830_v38 = vadd.f32 %v2258_v28, %v1829_v32  ;;  %v1986_v32 = vld [vmem:[%s3109_s10 + $0x8] sm:$0xff] }
0x1c05   :  { %2010 = vmatpush.msra.mxu3 %v1986_v32 }
0x1c06   :  { %v1834_v44 = vsel %vm1833_vm15, %v2258_v28, %v1830_v38 }
0x1c07   :  { %v1839_v58 = vsel %vm1836_vm0, %v1838_v47, %v1834_v44 }
0x1c08   :  { %v1847_v61 = vmul.f32 %v1839_v58, %v1761_v14  ;;  %v1856_v1 = vrot.slane %v1839_v58, 1 }
0x1c5e   :  { %v1843_v33 = vpop.permute.xlu0 %1842 }
0x1c5f   :  { %v1844_v34 = vrot.slane %v1843_v33, 1  ;;  %v1985_v33 = vld [vmem:[%s3109_s10] sm:$0xff] }
0x1c60   :  { %2011 = vmatpush.msra.mxu3 %v1985_v33 }
0x1c61   :  { %2259 = vtanh.f32 %v1844_v34  ;;  %v2142_v34 = vld [vmem:[#allocation5] ss:$0 sm:$0xff] }
0x1c67   :  { %v2260_v57 = vpop.eup %2259 }
0x1c68   :  { %v1848_v60 = vmul.f32 %v2260_v57, %v1839_v58 }
0x1c6a   :  { %1850 = vrot.lane.b32.xlu1 %v1848_v60, %s2436_s3 }
0x1cdc   :  { %v1851_v62 = vpop.permute.xlu1 %1850 }
0x1cdd   :  { %v1853_v63 = vadd.f32 %v1851_v62, %v1847_v61 }
0x1cdf   :  { %2261 = vtanh.f32 %v1853_v63 }
0x1ce5   :  { %v2262_v0 = vpop.eup %2261 }
0x1ce6   :  { %1859 = vrot.lane.b32.xlu2 %v2262_v0, %s2436_s3 }
0x1d40   :  { %v1860_v54 = vpop.permute.xlu2 %1859 }
0x1d41   :  { %v1862_v6 = vmul.f32 %v1860_v54, %v1856_v1 }
0x1d43   :  { %1863 = vst.msk [vmem:[#allocation4 + $0x6] sm:$0x1] %vm405_vm8, %v1862_v6  ;;  %2125 = vmatmul.msk.f32.vlgmr.msrb.gmra.mxu0 %vm200_vm2, %v1862_v6  ;;  %2126 = vmatmul.msk.f32.vlgmr.msrb.gmra.mxu1 %vm200_vm2, %v1862_v6 }
0x1dc0   :  { %v1905_v51 = vpop.f32.mrf.mxu1  ;;  %v1885_v2 = vpop.f32.mrf.mxu0 }
0x1dc1   :  { %v1910_v55 = vrot.slane %v1905_v51, 7 }
0x1dc3   :  { %v1911_v3 = vsel %vm360_vm3, %v1885_v2, %v1910_v55 }
0x1dc4   :  { %v1913_v5 = vadd.f32 %v1911_v3, %v1864_v4 }
0x1dc6   :  { %1934 = vrot.lane.b32.xlu0 %v1913_v5, %s2436_s3  ;;  %v2127_v30 = vmul.f32 -1.442695, %v1913_v5 }
0x1dc8   :  { %2263 = vpow2.f32 %v2127_v30 }
0x1dce   :  { %v2264_v56 = vpop.eup %2263 }
0x1dcf   :  { %v1917_v59 = vadd.f32 1.0, %v2264_v56 }
0x1dd1   :  { %2265 = vrcp.f32 %v1917_v59  ;;  %v1929_v46 = vand.u32 2147483648, %v1917_v59  ;;  %vm1923_vm3 = vweird.f32 %v1917_v59  ;;  %v1927_v48 = vand.u32 2147483647, %v1917_v59 }
0x1dd3   :  { %v1930_v49 = vor.u32 1.1754944e-38, %v1929_v46  ;;  %vm1928_vm6 = vcmp.eq.f32.partialorder %v1927_v48, 8.507059e+37 }
0x1dd7   :  { %v2266_v35 = vpop.eup %2265 }
0x1dd8   :  { %v1919_v36 = vmul.f32 %v2266_v35, %v1917_v59  ;;  %vm1924_vm4 = vweird.f32 %v2266_v35 }
0x1dd9   :  { %vm1925_vm5 = vmor %vm1923_vm3, %vm1924_vm4 }
0x1dda   :  { %v1920_v37 = vsub.f32 1.0, %v1919_v36 }
0x1ddc   :  { %v1921_v40 = vmul.f32 %v2266_v35, %v1920_v37 }
0x1dde   :  { %v1922_v43 = vadd.f32 %v2266_v35, %v1921_v40 }
0x1de0   :  { %v1926_v50 = vsel %vm1925_vm5, %v2266_v35, %v1922_v43 }
0x1de1   :  { %v1931_v53 = vsel %vm1928_vm6, %v1930_v49, %v1926_v50 }
0x1de2   :  { %v1939_v12 = vmul.f32 %v1931_v53, %v1853_v63  ;;  %v1948_v25 = vrot.slane %v1931_v53, 1 }
0x1e38   :  { %v1935_v42 = vpop.permute.xlu0 %1934 }
0x1e39   :  { %v1936_v45 = vrot.slane %v1935_v42, 1 }
0x1e3b   :  { %2267 = vtanh.f32 %v1936_v45 }
0x1e41   :  { %v2268_v52 = vpop.eup %2267 }
0x1e42   :  { %v1940_v8 = vmul.f32 %v2268_v52, %v1931_v53 }
0x1e44   :  { %1942 = vrot.lane.b32.xlu1 %v1940_v8, %s2436_s3 }
0x1eb6   :  { %v1943_v13 = vpop.permute.xlu1 %1942 }
0x1eb7   :  { %v1945_v14 = vadd.f32 %v1943_v13, %v1939_v12 }
0x1eb9   :  { %2269 = vtanh.f32 %v1945_v14 }
0x1ebf   :  { %v2270_v15 = vpop.eup %2269 }
0x1ec0   :  { %1951 = vrot.lane.b32.xlu2 %v2270_v15, %s2436_s3 }
0x1f1a   :  { %v1952_v26 = vpop.permute.xlu2 %1951 }
0x1f1b   :  { %v1954_v27 = vmul.f32 %v1952_v26, %v1948_v25 }
0x1f1d   :  { %1955 = vst.msk [vmem:[#allocation4 + $0x7] sm:$0x1] %vm405_vm8, %v1954_v27 }
0x1f24   :  { %v1956_v28 = vld [vmem:[#allocation4] sm:$0xff] }
0x1f25   :  { %1972 = vmatpush.msra.mxu2 %v1956_v28  ;;  %2130 = vmatmul.msk.f32.vlgmr.msra.gmra.mxu0 %vm200_vm2, %v1956_v28 }
0x1f26   :  { %2128 = vmatmul.msk.f32.vlgmr.msra.gmra.mxu2 %vm144_vm1, %v2541_v7 }
0x1fa2   :  { %v2036_v38 = vpop.f32.mrf.mxu0 }
0x1fa9   :  { %v1974_v7 = vpop.f32.mrf.mxu2 }
0x1faa   :  { %2129 = vmatmul.msk.f32.vlgmr.msra.gmra.mxu3 %vm200_vm2, %v1974_v7 }
0x202d   :  { %v2013_v39 = vpop.f32.mrf.mxu3 }
0x202e   :  { %v2037_v41 = vadd.f32 %v2036_v38, %v2013_v39 }
0x2030   :  { %v2043_v44 = vadd.f32 %v2142_v34, %v2037_v41 }
0x2032   :  { %v2131_v47 = vmul.f32 -1.442695, %v2043_v44 }
0x2034   :  { %2271 = vpow2.f32 %v2131_v47 }
0x203a   :  { %v2272_v57 = vpop.eup %2271 }
0x203b   :  { %v2047_v58 = vadd.f32 1.0, %v2272_v57 }
0x203d   :  { %2273 = vrcp.f32 %v2047_v58  ;;  %v2059_v63 = vand.u32 2147483648, %v2047_v58  ;;  %v2057_v1 = vand.u32 2147483647, %v2047_v58  ;;  %vm2053_vm8 = vweird.f32 %v2047_v58 }
0x203f   :  { %v2060_v6 = vor.u32 1.1754944e-38, %v2059_v63  ;;  %vm2058_vm9 = vcmp.eq.f32.partialorder %v2057_v1, 8.507059e+37 }
0x2043   :  { %v2274_v60 = vpop.eup %2273 }
0x2044   :  { %v2049_v61 = vmul.f32 %v2274_v60, %v2047_v58  ;;  %vm2054_vm1 = vweird.f32 %v2274_v60 }
0x2045   :  { %vm2055_vm2 = vmor %vm2053_vm8, %vm2054_vm1 }
0x2046   :  { %v2050_v62 = vsub.f32 1.0, %v2049_v61 }
0x2048   :  { %v2051_v0 = vmul.f32 %v2274_v60, %v2050_v62 }
0x204a   :  { %v2052_v54 = vadd.f32 %v2274_v60, %v2051_v0 }
0x204c   :  { %v2056_v51 = vsel %vm2055_vm2, %v2274_v60, %v2052_v54 }
0x204d   :  { %v2061_v55 = vsel %vm2058_vm9, %v2060_v6, %v2056_v51 }
0x204e   :  { %2064 = vst.msk [vmem:[%s3111_s12] sm:$0xff] %vm2063_vm7, %v2061_v55 }
0x204f   :  { %2069 = vsyncpa [#allocation7], 1 }
0x2050   :  { %2070 = vsyncpa [#allocation9], 1 }
0x2051   :  { %2071 = vsyncpa [#allocation12], 1 }
0x2052   :  { %2072 = vsyncpa [#allocation15], 1 }

</bundles_post_ra>
